<compile_context>
chip_gen: v5e
topology: v5e:2x2
jax: 0.10.0
libtpu: 0.0.40
codegen_flags: <defaults>
</compile_context>

<pallas_src>
import functools

import jax
import jax.numpy as jnp
import numpy as np
from jax import lax
from jax.experimental import pallas as pl
from jax.experimental.pallas import tpu as pltpu


def _round_up(v, m):
    return (v + m - 1) // m * m


def _sigmoid(x):
    # 1 / (1 + exp(-x)); exp and the approx reciprocal both issue on the EUP slot.
    return pl.reciprocal(1.0 + jnp.exp(-x), approx=True)


# ---------------- Pallas kernels ----------------

def _double_round_kernel(h_size, num_levels,
                         x_ref, el_ref, nmask_ref, emask_ref, gsrc_ref, sdst_ref,
                         wcat1_ref, ucat1_ref, biou1_ref, bf1_ref,
                         wcat2_ref, ucat2_ref, biou2_ref, bf2_ref,
                         h_out_ref,
                         hc_st, ioumid_st, ioux_st, wfeb_st):
    """Both LSTM rounds of one direction; grid axis = direction (independent, parallel)."""
    h3 = 3 * h_size
    gsrc = gsrc_ref[...]              # (E, n) bf16 one-hot of edge_index[1]  (gather)
    sdst = sdst_ref[...]              # (n, E) bf16 one-hot of edge_index[0]  (scatter_add)
    el = el_ref[...]                  # (E, 1) f32 edge labels

    def init_round(x_val, wcat, b_f):
        # fused input projection x @ [W_iou | W_f] -> (n, 4h); lane-dense (4h = 128) output
        xw = jnp.dot(x_val.astype(jnp.bfloat16), wcat, preferred_element_type=jnp.float32)
        ioux_st[...] = xw[:, 0:h3]
        # level-invariant per-edge gather of W_f(x); fold b_f in once
        wfeb_st[...] = jnp.dot(gsrc, xw[:, h3:h3 + h_size].astype(jnp.bfloat16),
                               preferred_element_type=jnp.float32) + b_f
        hc_st[...] = jnp.zeros_like(hc_st)
        ioumid_st[...] = jnp.zeros_like(ioumid_st)

    def level_step(lvl, ucat, biou):
        nm = nmask_ref[lvl]           # (n, 1) nodes updated at this level
        em = emask_ref[lvl]           # (E, 1) edges active at this level
        hc = hc_st[...]               # (n, 2h) = [h | c]
        h = hc[:, 0:h_size]
        c = hc[:, h_size:2 * h_size]

        # message(): gather [h | c] of every edge's source node in ONE (E,n)x(n,2h) MXU pass
        hc_j = jnp.dot(gsrc, hc.astype(jnp.bfloat16), preferred_element_type=jnp.float32)
        hc_j = jnp.where(em > 0.0, hc_j, 0.0)        # inactive edges contribute nothing (NaN safe)
        h_j = hc_j[:, 0:h_size]
        c_j = hc_j[:, h_size:2 * h_size]

        # fused U matmul: [h_t0 | h_t1] (E, 2h) x [U_iou | U_f] (2h, 4h) -> one MXU pass
        h_t1 = el * h_j
        h_two = jnp.concatenate([h_j - h_t1, h_t1], axis=1)
        u_out = jnp.dot(h_two.astype(jnp.bfloat16), ucat, preferred_element_type=jnp.float32)

        f = _sigmoid(wfeb_st[...] + u_out[:, h3:h3 + h_size])
        c_j = jnp.clip(c_j, -1.0e14, 1.0e14)         # torch.clamp in the reference message()
        f_post = f * c_j

        # fused scatter_add of [iou_pre | f*c_j] (E, 4h = 128 lanes) in ONE (n,E)x(E,4h) pass
        payload = jnp.concatenate([u_out[:, 0:h3], f_post], axis=1)
        scat = jnp.dot(sdst, payload.astype(jnp.bfloat16), preferred_element_type=jnp.float32)
        iou_mid = ioumid_st[...] + scat[:, 0:h3]     # persistent accumulator (matches reference)
        c_acc = c + scat[:, h3:h3 + h_size]

        # update(): node-level LSTM cell, applied only to this level's nodes
        # TODO(synk): gate math still uses 32-lane slices; the iota-lane-mask + pltpu.roll
        # lane-dense formulation would cut EUP/VALU issues further.
        iou = ioux_st[...] + iou_mid + biou          # (n, 3h)
        i_g = _sigmoid(iou[:, 0:h_size])
        o_g = _sigmoid(iou[:, h_size:2 * h_size])
        u_g = jnp.tanh(iou[:, 2 * h_size:h3])
        c_temp = i_g * u_g + c_acc
        c_new = jnp.where(nm > 0.0, c_temp, c_acc)
        h_new = jnp.where(nm > 0.0, o_g * jnp.tanh(c_temp), h)

        hc_st[...] = jnp.concatenate([h_new, c_new], axis=1)
        ioumid_st[...] = iou_mid

    def run_levels(ucat, biou):
        if num_levels <= 16:
            for lvl in range(num_levels):            # static unroll: scheduler sees across levels
                level_step(lvl, ucat, biou)
        else:
            def body(lvl, carry):
                level_step(lvl, ucat, biou)
                return carry
            lax.fori_loop(0, num_levels, body, 0)

    # ---- round 1 ----
    init_round(x_ref[...], wcat1_ref[...], bf1_ref[...])
    run_levels(ucat1_ref[...], biou1_ref[...])

    # ---- round 2 (input = round-1 h, kept in VMEM) ----
    h1 = hc_st[:, 0:h_size]
    init_round(h1, wcat2_ref[...], bf2_ref[...])
    run_levels(ucat2_ref[...], biou2_ref[...])

    h_out_ref[...] = hc_st[:, 0:h_size]              # single output store per direction


def _pack_fc_kernel(h_ref, pack_ref, w1_ref, w2_ref, b_ref, o_ref):
    # concat([h_fwd, h_bwd], -1) @ W + b == h_fwd @ W[:h] + h_bwd @ W[h:] + b; the per-graph
    # packing into (graph_num*max_node_num, h) rows is a one-hot matmul fused into the kernel
    # (padded slots get bias only, matching the zero-padded reference).
    y = (jnp.dot(h_ref[0].astype(jnp.bfloat16), w1_ref[...], preferred_element_type=jnp.float32)
         + jnp.dot(h_ref[1].astype(jnp.bfloat16), w2_ref[...], preferred_element_type=jnp.float32))
    o_ref[...] = jnp.dot(pack_ref[...], y, preferred_element_type=jnp.float32) + b_ref[...]


# ---------------- host-side constant building ----------------

def _direction_consts(edge_index, edge_attr, node_levels, edge_levels, n, n_pad, e_pad, l_pad):
    num_edges = edge_index.shape[1]
    gsrc = np.zeros((e_pad, n_pad), np.float32)
    gsrc[np.arange(num_edges), np.asarray(edge_index[1], np.int64)] = 1.0
    sdst = np.zeros((n_pad, e_pad), np.float32)
    sdst[np.asarray(edge_index[0], np.int64), np.arange(num_edges)] = 1.0
    el = np.zeros((e_pad, 1), np.float32)
    el[:num_edges, 0] = np.asarray(edge_attr, np.float32).reshape(-1)
    nmask = np.zeros((l_pad, n_pad, 1), np.float32)
    emask = np.zeros((l_pad, e_pad, 1), np.float32)
    for lvl in range(len(node_levels)):
        idx = np.asarray(node_levels[lvl], np.int64)
        if idx.size:
            nmask[lvl, idx, 0] = 1.0
        if 0 < lvl < len(edge_levels):               # level 0 never propagates (reference)
            eidx = np.asarray(edge_levels[lvl], np.int64)
            if eidx.size:
                emask[lvl, eidx, 0] = 1.0
    return gsrc, sdst, el, nmask, emask


def _pad_rows(x, rows):
    x = np.asarray(x, np.float32)
    if x.shape[0] < rows:
        x = np.concatenate([x, np.zeros((rows - x.shape[0],) + x.shape[1:], np.float32)], 0)
    return x


def _fuse_round_weights(p):
    wcat = jnp.concatenate([p['W_iou_t'], p['W_f_t']], axis=1).astype(jnp.bfloat16)
    ucat = jnp.concatenate([p['U_iou_t'], p['U_f_t']], axis=1).astype(jnp.bfloat16)
    return wcat, ucat, jnp.asarray(p['b_iou'], jnp.float32), jnp.asarray(p['b_f'], jnp.float32)


# ---------------- model glue ----------------

def fused_double_round(params, g1, g1_order, g1_order_mask,
                       g2, g2_order, g2_order_mask, h_size):
    """Both SingleRoundGraphLSTM rounds of both directions in one pallas_call."""
    x1 = np.asarray(g1['x'], np.float32)
    x2 = np.asarray(g2['x'], np.float32)
    n, x_size = x1.shape
    num_edges = g1['edge_index'].shape[1]
    assert x2.shape == x1.shape
    assert g2['edge_index'].shape[1] == num_edges

    n_pad = _round_up(n, 8)
    e_pad = _round_up(max(num_edges, 1), 8)
    num_levels = max(len(g1_order), len(g2_order))

    c1 = _direction_consts(g1['edge_index'], g1['edge_attr'], g1_order, g1_order_mask,
                           n, n_pad, e_pad, num_levels)
    c2 = _direction_consts(g2['edge_index'], g2['edge_attr'], g2_order, g2_order_mask,
                           n, n_pad, e_pad, num_levels)

    gsrc = jnp.asarray(np.stack([c1[0], c2[0]]), jnp.bfloat16)   # 0/1 is exact in bf16
    sdst = jnp.asarray(np.stack([c1[1], c2[1]]), jnp.bfloat16)
    el = jnp.asarray(np.stack([c1[2], c2[2]]))
    nmask = jnp.asarray(np.stack([c1[3], c2[3]]))
    emask = jnp.asarray(np.stack([c1[4], c2[4]]))
    x = jnp.asarray(np.stack([_pad_rows(x1, n_pad), _pad_rows(x2, n_pad)]))

    wf1 = _fuse_round_weights(params['fwd1'])
    wb1 = _fuse_round_weights(params['bwd1'])
    wf2 = _fuse_round_weights(params['fwd2'])
    wb2 = _fuse_round_weights(params['bwd2'])
    wcat1 = jnp.stack([wf1[0], wb1[0]]); ucat1 = jnp.stack([wf1[1], wb1[1]])
    biou1 = jnp.stack([wf1[2], wb1[2]]); bf1 = jnp.stack([wf1[3], wb1[3]])
    wcat2 = jnp.stack([wf2[0], wb2[0]]); ucat2 = jnp.stack([wf2[1], wb2[1]])
    biou2 = jnp.stack([wf2[2], wb2[2]]); bf2 = jnp.stack([wf2[3], wb2[3]])

    h4 = 4 * h_size

    def d3(shape):
        return pl.BlockSpec((None,) + shape, lambda d: (d, 0, 0))

    def d4(shape):
        return pl.BlockSpec((None,) + shape, lambda d: (d, 0, 0, 0))

    in_specs = [
        d3((n_pad, x_size)),                 # x
        d3((e_pad, 1)),                      # edge labels
        d4((num_levels, n_pad, 1)),          # node masks  [L, n, 1]
        d4((num_levels, e_pad, 1)),          # edge masks  [L, E, 1]
        d3((e_pad, n_pad)),                  # gather one-hot
        d3((n_pad, e_pad)),                  # scatter one-hot
        d3((x_size, h4)),                    # [W_iou | W_f]   round 1
        d3((2 * h_size, h4)),                # [U_iou | U_f]   round 1
        d3((1, 3 * h_size)),                 # b_iou           round 1
        d3((1, h_size)),                     # b_f             round 1
        d3((h_size, h4)),                    # [W_iou | W_f]   round 2
        d3((2 * h_size, h4)),                # [U_iou | U_f]   round 2
        d3((1, 3 * h_size)),                 # b_iou           round 2
        d3((1, h_size)),                     # b_f             round 2
    ]
    out_spec = d3((n_pad, h_size))

    scratch = [
        pltpu.VMEM((n_pad, 2 * h_size), jnp.float32),   # [h | c] state
        pltpu.VMEM((n_pad, 3 * h_size), jnp.float32),   # iou_mid accumulator
        pltpu.VMEM((n_pad, 3 * h_size), jnp.float32),   # W_iou(x) of current round
        pltpu.VMEM((e_pad, h_size), jnp.float32),       # W_f(x) gathered per edge + b_f
    ]

    # derive the VMEM limit from the real per-block + scratch footprint (double-buffered blocks)
    operands = [x, el, nmask, emask, gsrc, sdst,
                wcat1, ucat1, biou1, bf1, wcat2, ucat2, biou2, bf2]
    block_bytes = sum(int(np.prod(a.shape[1:])) * a.dtype.itemsize for a in operands)
    block_bytes += n_pad * h_size * 4                   # output block
    scratch_bytes = (n_pad * 8 * h_size + e_pad * h_size) * 4
    vmem_limit = int(min(max(4 * block_bytes + 2 * scratch_bytes, 8 * 1024 * 1024),
                         128 * 1024 * 1024))

    h_out = pl.pallas_call(
        functools.partial(_double_round_kernel, h_size, num_levels),
        out_shape=jax.ShapeDtypeStruct((2, n_pad, h_size), jnp.float32),
        grid_spec=pltpu.PrefetchScalarGridSpec(
            num_scalar_prefetch=0,
            grid=(2,),                                  # direction axis (independent)
            in_specs=in_specs,
            out_specs=out_spec,
            scratch_shapes=scratch),
        compiler_params=pltpu.CompilerParams(
            dimension_semantics=("parallel",),
            vmem_limit_bytes=vmem_limit),
    )(x, el, nmask, emask, gsrc, sdst,
      wcat1, ucat1, biou1, bf1, wcat2, ucat2, biou2, bf2)
    return h_out, n_pad


def graph_lstm_pyg_double(params, g1, g1_order, g1_order_mask,
                          g2, g2_order, g2_order_mask, len_input,
                          h_size, max_node_num, output_size):
    """GraphLSTM_pyg_double.forward (both directions, both rounds, pack + FC)."""
    h_out, n_pad = fused_double_round(params, g1, g1_order, g1_order_mask,
                                      g2, g2_order, g2_order_mask, h_size)

    graph_num = len(len_input)
    rows = graph_num * max_node_num
    pack = np.zeros((rows, n_pad), np.float32)   # one-hot row map (replaces per-graph .at[].set loop)
    accu = 0
    for i in range(graph_num):
        gnum = int(len_input[i])
        if gnum > 0:
            pack[i * max_node_num + np.arange(gnum), accu + np.arange(gnum)] = 1.0
        accu += gnum
    pack = jnp.asarray(pack)

    w1 = jnp.asarray(params['fc_w_t'][:h_size], jnp.bfloat16)
    w2 = jnp.asarray(params['fc_w_t'][h_size:], jnp.bfloat16)
    b = jnp.asarray(params['fc_b'], jnp.float32)

    vmem_specs = [pl.BlockSpec(memory_space=pltpu.MemorySpace.VMEM) for _ in range(5)]
    out = pl.pallas_call(
        _pack_fc_kernel,
        out_shape=jax.ShapeDtypeStruct((rows, output_size), jnp.float32),
        in_specs=vmem_specs,
        out_specs=pl.BlockSpec(memory_space=pltpu.MemorySpace.VMEM),
    )(h_out, pack, w1, w2, b)
    return out.reshape(graph_num, max_node_num, output_size)


def init_params(key, x_size, h_size, output_size):
    keys = jax.random.split(key, 6)

    def round_params(k, in_size):
        ks = jax.random.split(k, 4)
        return {
            'W_iou_t': 0.1 * jax.random.normal(ks[0], (in_size, 3 * h_size), jnp.float32),
            'W_f_t':   0.1 * jax.random.normal(ks[1], (in_size, h_size), jnp.float32),
            'b_iou':   jnp.zeros((1, 3 * h_size), jnp.float32),
            'b_f':     jnp.zeros((1, h_size), jnp.float32),
            'U_iou_t': 0.1 * jax.random.normal(ks[2], (2 * h_size, 3 * h_size), jnp.float32),
            'U_f_t':   0.1 * jax.random.normal(ks[3], (2 * h_size, h_size), jnp.float32),
        }

    return {
        'fwd1': round_params(keys[0], x_size),
        'fwd2': round_params(keys[1], h_size),
        'bwd1': round_params(keys[2], x_size),
        'bwd2': round_params(keys[3], h_size),
        'fc_w_t': 0.1 * jax.random.normal(keys[4], (2 * h_size, output_size), jnp.float32),
        'fc_b':   0.05 * jax.random.normal(keys[5], (1, output_size), jnp.float32),
    }


if __name__ == "__main__":
    # TODO(synk): the TimeCounter profiling instrumentation of the original module is not reproduced.
    x_size, h_size, output_size, max_node_num = 16, 32, 8, 8
    key = jax.random.PRNGKey(0)
    kp, kx1, kx2, ke1, ke2 = jax.random.split(key, 5)
    params = init_params(kp, x_size, h_size, output_size)

    # two graphs batched together: 5 nodes + 3 nodes = 8 nodes total
    n_nodes = 8
    len_input = [5, 3]

    x1 = jax.random.normal(kx1, (n_nodes, x_size), jnp.float32)
    x2 = jax.random.normal(kx2, (n_nodes, x_size), jnp.float32)

    # forward graph: edges (dst=parent, src=child)
    g1_edge_index = np.array([[2, 2, 4, 4, 7, 7],
                              [0, 1, 2, 3, 5, 6]], dtype=np.int32)
    g1_edge_attr = jax.random.bernoulli(ke1, 0.5, (6, 1)).astype(jnp.float32)
    g1_order = [np.array([0, 1, 3, 5, 6], np.int32),     # nodes updated per level
                np.array([2, 7], np.int32),
                np.array([4], np.int32)]
    g1_order_mask = [np.array([], np.int32),             # edges active per level
                     np.array([0, 1, 4, 5], np.int32),
                     np.array([2, 3], np.int32)]

    # backward graph: reversed edge directions, reversed level ordering
    g2_edge_index = np.array([[2, 3, 0, 1, 5, 6],
                              [4, 4, 2, 2, 7, 7]], dtype=np.int32)
    g2_edge_attr = jax.random.bernoulli(ke2, 0.5, (6, 1)).astype(jnp.float32)
    g2_order = [np.array([4, 7], np.int32),
                np.array([2, 3, 5, 6], np.int32),
                np.array([0, 1], np.int32)]
    g2_order_mask = [np.array([], np.int32),
                     np.array([0, 1, 4, 5], np.int32),
                     np.array([2, 3], np.int32)]

    g1 = {'x': x1, 'edge_index': g1_edge_index, 'edge_attr': g1_edge_attr}
    g2 = {'x': x2, 'edge_index': g2_edge_index, 'edge_attr': g2_edge_attr}

    out = graph_lstm_pyg_double(params, g1, g1_order, g1_order_mask,
                                g2, g2_order, g2_order_mask, len_input,
                                h_size, max_node_num, output_size)
    out = jax.block_until_ready(out)
    assert out.shape == (len(len_input), max_node_num, output_size)
    assert bool(jnp.all(jnp.isfinite(out)))
    print("KERNEL_OK")
</pallas_src>

<mosaic_0001>
module attributes {stable_mosaic.version = 11 : i64} {
  func.func @_double_round_kernel(%arg0: i32, %arg1: memref<1x8x16xf32, #tpu.memory_space<vmem>>, %arg2: memref<1x8x1xf32, #tpu.memory_space<vmem>>, %arg3: memref<1x3x8x1xf32, #tpu.memory_space<vmem>>, %arg4: memref<1x3x8x1xf32, #tpu.memory_space<vmem>>, %arg5: memref<1x8x8xbf16, #tpu.memory_space<vmem>>, %arg6: memref<1x8x8xbf16, #tpu.memory_space<vmem>>, %arg7: memref<1x16x128xbf16, #tpu.memory_space<vmem>>, %arg8: memref<1x64x128xbf16, #tpu.memory_space<vmem>>, %arg9: memref<1x1x96xf32, #tpu.memory_space<vmem>>, %arg10: memref<1x1x32xf32, #tpu.memory_space<vmem>>, %arg11: memref<1x32x128xbf16, #tpu.memory_space<vmem>>, %arg12: memref<1x64x128xbf16, #tpu.memory_space<vmem>>, %arg13: memref<1x1x96xf32, #tpu.memory_space<vmem>>, %arg14: memref<1x1x32xf32, #tpu.memory_space<vmem>>, %arg15: memref<1x8x32xf32, #tpu.memory_space<vmem>>, %arg16: memref<8x64xf32, #tpu.memory_space<vmem>>, %arg17: memref<8x96xf32, #tpu.memory_space<vmem>>, %arg18: memref<8x96xf32, #tpu.memory_space<vmem>>, %arg19: memref<8x32xf32, #tpu.memory_space<vmem>>) attributes {dimension_semantics = [#tpu.dimension_semantics<parallel>], iteration_bounds = array<i64: 2>, scalar_prefetch = 0 : i64, scratch_operands = 4 : i64, tpu.core_type = #tpu.core_type<tc>, window_params = [{transform_indices = @transform_0, window_bounds = array<i64: 1, 8, 16>}, {transform_indices = @transform_1, window_bounds = array<i64: 1, 8, 1>}, {transform_indices = @transform_2, window_bounds = array<i64: 1, 3, 8, 1>}, {transform_indices = @transform_3, window_bounds = array<i64: 1, 3, 8, 1>}, {transform_indices = @transform_4, window_bounds = array<i64: 1, 8, 8>}, {transform_indices = @transform_5, window_bounds = array<i64: 1, 8, 8>}, {transform_indices = @transform_6, window_bounds = array<i64: 1, 16, 128>}, {transform_indices = @transform_7, window_bounds = array<i64: 1, 64, 128>}, {transform_indices = @transform_8, window_bounds = array<i64: 1, 1, 96>}, {transform_indices = @transform_9, window_bounds = array<i64: 1, 1, 32>}, {transform_indices = @transform_10, window_bounds = array<i64: 1, 32, 128>}, {transform_indices = @transform_11, window_bounds = array<i64: 1, 64, 128>}, {transform_indices = @transform_12, window_bounds = array<i64: 1, 1, 96>}, {transform_indices = @transform_13, window_bounds = array<i64: 1, 1, 32>}, {transform_indices = @transform_14, window_bounds = array<i64: 1, 8, 32>}]} {
    %c0 = arith.constant 0 : index
    %c0_0 = arith.constant 0 : index
    %c0_1 = arith.constant 0 : index
    %0 = vector.load %arg5[%c0, %c0_0, %c0_1] : memref<1x8x8xbf16, #tpu.memory_space<vmem>>, vector<1x8x8xbf16>
    %1 = vector.shape_cast %0 : vector<1x8x8xbf16> to vector<8x8xbf16>
    %c0_2 = arith.constant 0 : index
    %c0_3 = arith.constant 0 : index
    %c0_4 = arith.constant 0 : index
    %2 = vector.load %arg6[%c0_2, %c0_3, %c0_4] : memref<1x8x8xbf16, #tpu.memory_space<vmem>>, vector<1x8x8xbf16>
    %3 = vector.shape_cast %2 : vector<1x8x8xbf16> to vector<8x8xbf16>
    %c0_5 = arith.constant 0 : index
    %c0_6 = arith.constant 0 : index
    %c0_7 = arith.constant 0 : index
    %4 = vector.load %arg2[%c0_5, %c0_6, %c0_7] : memref<1x8x1xf32, #tpu.memory_space<vmem>>, vector<1x8x1xf32>
    %5 = vector.shape_cast %4 : vector<1x8x1xf32> to vector<8x1xf32>
    %c0_8 = arith.constant 0 : index
    %c0_9 = arith.constant 0 : index
    %c0_10 = arith.constant 0 : index
    %6 = vector.load %arg1[%c0_8, %c0_9, %c0_10] : memref<1x8x16xf32, #tpu.memory_space<vmem>>, vector<1x8x16xf32>
    %7 = vector.shape_cast %6 : vector<1x8x16xf32> to vector<8x16xf32>
    %c0_11 = arith.constant 0 : index
    %c0_12 = arith.constant 0 : index
    %c0_13 = arith.constant 0 : index
    %8 = vector.load %arg7[%c0_11, %c0_12, %c0_13] : memref<1x16x128xbf16, #tpu.memory_space<vmem>>, vector<1x16x128xbf16>
    %9 = vector.shape_cast %8 : vector<1x16x128xbf16> to vector<16x128xbf16>
    %c0_14 = arith.constant 0 : index
    %c0_15 = arith.constant 0 : index
    %c0_16 = arith.constant 0 : index
    %10 = vector.load %arg10[%c0_14, %c0_15, %c0_16] : memref<1x1x32xf32, #tpu.memory_space<vmem>>, vector<1x1x32xf32>
    %11 = vector.shape_cast %10 : vector<1x1x32xf32> to vector<1x32xf32>
    %12 = arith.truncf %7 : vector<8x16xf32> to vector<8x16xbf16>
    %cst = arith.constant dense<0.000000e+00> : vector<8x128xf32>
    %13 = tpu.matmul %12, %9, %cst {dimension_numbers = #tpu.dot_dimension_numbers<[1], [0], [0], [1], [0, 0, 1, 1], [], []>} : vector<8x16xbf16>, vector<16x128xbf16>, vector<8x128xf32> -> vector<8x128xf32>
    %14 = vector.extract_strided_slice %13 {offsets = [0, 0], sizes = [8, 96], strides = [1, 1]} : vector<8x128xf32> to vector<8x96xf32>
    %c0_17 = arith.constant 0 : index
    %c0_18 = arith.constant 0 : index
    %15 = vector.load %arg18[%c0_17, %c0_18] : memref<8x96xf32, #tpu.memory_space<vmem>>, vector<8x96xf32>
    tpu.vector_store %arg18[%c0_17, %c0_18], %14 {strides = array<i32>} : memref<8x96xf32, #tpu.memory_space<vmem>>, vector<8x96xf32>,
    %16 = vector.extract_strided_slice %13 {offsets = [0, 96], sizes = [8, 32], strides = [1, 1]} : vector<8x128xf32> to vector<8x32xf32>
    %17 = arith.truncf %16 : vector<8x32xf32> to vector<8x32xbf16>
    %cst_19 = arith.constant dense<0.000000e+00> : vector<8x32xf32>
    %18 = tpu.matmul %1, %17, %cst_19 {dimension_numbers = #tpu.dot_dimension_numbers<[1], [0], [0], [1], [0, 0, 1, 1], [], []>} : vector<8x8xbf16>, vector<8x32xbf16>, vector<8x32xf32> -> vector<8x32xf32>
    %19 = vector.broadcast %11 : vector<1x32xf32> to vector<8x32xf32>
    %20 = arith.addf %18, %19 : vector<8x32xf32>
    %c0_20 = arith.constant 0 : index
    %c0_21 = arith.constant 0 : index
    %21 = vector.load %arg19[%c0_20, %c0_21] : memref<8x32xf32, #tpu.memory_space<vmem>>, vector<8x32xf32>
    tpu.vector_store %arg19[%c0_20, %c0_21], %20 {strides = array<i32>} : memref<8x32xf32, #tpu.memory_space<vmem>>, vector<8x32xf32>,
    %cst_22 = arith.constant 0.000000e+00 : f32
    %22 = vector.broadcast %cst_22 : f32 to vector<8x64xf32>
    %c0_23 = arith.constant 0 : index
    %c0_24 = arith.constant 0 : index
    %23 = vector.load %arg16[%c0_23, %c0_24] : memref<8x64xf32, #tpu.memory_space<vmem>>, vector<8x64xf32>
    tpu.vector_store %arg16[%c0_23, %c0_24], %22 {strides = array<i32>} : memref<8x64xf32, #tpu.memory_space<vmem>>, vector<8x64xf32>,
    %cst_25 = arith.constant 0.000000e+00 : f32
    %24 = vector.broadcast %cst_25 : f32 to vector<8x96xf32>
    %c0_26 = arith.constant 0 : index
    %c0_27 = arith.constant 0 : index
    %25 = vector.load %arg17[%c0_26, %c0_27] : memref<8x96xf32, #tpu.memory_space<vmem>>, vector<8x96xf32>
    tpu.vector_store %arg17[%c0_26, %c0_27], %24 {strides = array<i32>} : memref<8x96xf32, #tpu.memory_space<vmem>>, vector<8x96xf32>,
    %c0_28 = arith.constant 0 : index
    %c0_29 = arith.constant 0 : index
    %c0_30 = arith.constant 0 : index
    %26 = vector.load %arg8[%c0_28, %c0_29, %c0_30] : memref<1x64x128xbf16, #tpu.memory_space<vmem>>, vector<1x64x128xbf16>
    %27 = vector.shape_cast %26 : vector<1x64x128xbf16> to vector<64x128xbf16>
    %c0_31 = arith.constant 0 : index
    %c0_32 = arith.constant 0 : index
    %c0_33 = arith.constant 0 : index
    %28 = vector.load %arg9[%c0_31, %c0_32, %c0_33] : memref<1x1x96xf32, #tpu.memory_space<vmem>>, vector<1x1x96xf32>
    %29 = vector.shape_cast %28 : vector<1x1x96xf32> to vector<1x96xf32>
    %c0_34 = arith.constant 0 : index
    %c0_35 = arith.constant 0 : index
    %c0_36 = arith.constant 0 : index
    %c0_37 = arith.constant 0 : index
    %30 = vector.load %arg3[%c0_34, %c0_35, %c0_36, %c0_37] : memref<1x3x8x1xf32, #tpu.memory_space<vmem>>, vector<1x1x8x1xf32>
    %31 = vector.shape_cast %30 : vector<1x1x8x1xf32> to vector<8x1xf32>
    %c0_38 = arith.constant 0 : index
    %c0_39 = arith.constant 0 : index
    %c0_40 = arith.constant 0 : index
    %c0_41 = arith.constant 0 : index
    %32 = vector.load %arg4[%c0_38, %c0_39, %c0_40, %c0_41] : memref<1x3x8x1xf32, #tpu.memory_space<vmem>>, vector<1x1x8x1xf32>
    %33 = vector.shape_cast %32 : vector<1x1x8x1xf32> to vector<8x1xf32>
    %c0_42 = arith.constant 0 : index
    %c0_43 = arith.constant 0 : index
    %34 = vector.load %arg16[%c0_42, %c0_43] : memref<8x64xf32, #tpu.memory_space<vmem>>, vector<8x64xf32>
    %35 = vector.extract_strided_slice %34 {offsets = [0, 0], sizes = [8, 32], strides = [1, 1]} : vector<8x64xf32> to vector<8x32xf32>
    %36 = vector.extract_strided_slice %34 {offsets = [0, 32], sizes = [8, 32], strides = [1, 1]} : vector<8x64xf32> to vector<8x32xf32>
    %37 = arith.truncf %34 : vector<8x64xf32> to vector<8x64xbf16>
    %cst_44 = arith.constant dense<0.000000e+00> : vector<8x64xf32>
    %38 = tpu.matmul %1, %37, %cst_44 {dimension_numbers = #tpu.dot_dimension_numbers<[1], [0], [0], [1], [0, 0, 1, 1], [], []>} : vector<8x8xbf16>, vector<8x64xbf16>, vector<8x64xf32> -> vector<8x64xf32>
    %cst_45 = arith.constant 0.000000e+00 : f32
    %39 = vector.broadcast %cst_45 : f32 to vector<8x1xf32>
    %40 = arith.cmpf ogt, %33, %39 : vector<8x1xf32>
    %cst_46 = arith.constant 0.000000e+00 : f32
    %41 = vector.shape_cast %40 : vector<8x1xi1> to vector<8x1xi1>
    %42 = vector.broadcast %41 : vector<8x1xi1> to vector<8x64xi1>
    %43 = vector.broadcast %cst_46 : f32 to vector<8x64xf32>
    %44 = arith.select %42, %38, %43 : vector<8x64xi1>, vector<8x64xf32>
    %45 = vector.extract_strided_slice %44 {offsets = [0, 0], sizes = [8, 32], strides = [1, 1]} : vector<8x64xf32> to vector<8x32xf32>
    %46 = vector.extract_strided_slice %44 {offsets = [0, 32], sizes = [8, 32], strides = [1, 1]} : vector<8x64xf32> to vector<8x32xf32>
    %47 = vector.broadcast %5 : vector<8x1xf32> to vector<8x32xf32>
    %48 = arith.mulf %47, %45 : vector<8x32xf32>
    %49 = arith.subf %45, %48 : vector<8x32xf32>
    %50 = tpu.concatenate %49, %48 in 1 : vector<8x32xf32>, vector<8x32xf32> -> vector<8x64xf32>
    %51 = arith.truncf %50 : vector<8x64xf32> to vector<8x64xbf16>
    %cst_47 = arith.constant dense<0.000000e+00> : vector<8x128xf32>
    %52 = tpu.matmul %51, %27, %cst_47 {dimension_numbers = #tpu.dot_dimension_numbers<[1], [0], [0], [1], [0, 0, 1, 1], [], []>} : vector<8x64xbf16>, vector<64x128xbf16>, vector<8x128xf32> -> vector<8x128xf32>
    %c0_48 = arith.constant 0 : index
    %c0_49 = arith.constant 0 : index
    %53 = vector.load %arg19[%c0_48, %c0_49] : memref<8x32xf32, #tpu.memory_space<vmem>>, vector<8x32xf32>
    %54 = vector.extract_strided_slice %52 {offsets = [0, 96], sizes = [8, 32], strides = [1, 1]} : vector<8x128xf32> to vector<8x32xf32>
    %55 = arith.addf %53, %54 : vector<8x32xf32>
    %cst_50 = arith.constant 0.000000e+00 : f32
    %56 = vector.broadcast %cst_50 : f32 to vector<8x32xf32>
    %57 = arith.subf %56, %55 : vector<8x32xf32>
    %58 = math.exp %57 : vector<8x32xf32>
    %cst_51 = arith.constant 1.000000e+00 : f32
    %59 = vector.broadcast %cst_51 : f32 to vector<8x32xf32>
    %60 = arith.addf %59, %58 : vector<8x32xf32>
    %61 = tpu.reciprocal %60 {approx = true} : vector<8x32xf32> -> vector<8x32xf32>
    %cst_52 = arith.constant -1.000000e+14 : f32
    %cst_53 = arith.constant 1.000000e+14 : f32
    %62 = vector.broadcast %cst_52 : f32 to vector<8x32xf32>
    %63 = arith.maximumf %62, %46 : vector<8x32xf32>
    %64 = vector.broadcast %cst_53 : f32 to vector<8x32xf32>
    %65 = arith.minimumf %64, %63 : vector<8x32xf32>
    %66 = arith.mulf %61, %65 : vector<8x32xf32>
    %67 = vector.extract_strided_slice %52 {offsets = [0, 0], sizes = [8, 96], strides = [1, 1]} : vector<8x128xf32> to vector<8x96xf32>
    %68 = tpu.concatenate %67, %66 in 1 : vector<8x96xf32>, vector<8x32xf32> -> vector<8x128xf32>
    %69 = arith.truncf %68 : vector<8x128xf32> to vector<8x128xbf16>
    %cst_54 = arith.constant dense<0.000000e+00> : vector<8x128xf32>
    %70 = tpu.matmul %3, %69, %cst_54 {dimension_numbers = #tpu.dot_dimension_numbers<[1], [0], [0], [1], [0, 0, 1, 1], [], []>} : vector<8x8xbf16>, vector<8x128xbf16>, vector<8x128xf32> -> vector<8x128xf32>
    %c0_55 = arith.constant 0 : index
    %c0_56 = arith.constant 0 : index
    %71 = vector.load %arg17[%c0_55, %c0_56] : memref<8x96xf32, #tpu.memory_space<vmem>>, vector<8x96xf32>
    %72 = vector.extract_strided_slice %70 {offsets = [0, 0], sizes = [8, 96], strides = [1, 1]} : vector<8x128xf32> to vector<8x96xf32>
    %73 = arith.addf %71, %72 : vector<8x96xf32>
    %74 = vector.extract_strided_slice %70 {offsets = [0, 96], sizes = [8, 32], strides = [1, 1]} : vector<8x128xf32> to vector<8x32xf32>
    %75 = arith.addf %36, %74 : vector<8x32xf32>
    %c0_57 = arith.constant 0 : index
    %c0_58 = arith.constant 0 : index
    %76 = vector.load %arg18[%c0_57, %c0_58] : memref<8x96xf32, #tpu.memory_space<vmem>>, vector<8x96xf32>
    %77 = arith.addf %76, %73 : vector<8x96xf32>
    %78 = vector.broadcast %29 : vector<1x96xf32> to vector<8x96xf32>
    %79 = arith.addf %77, %78 : vector<8x96xf32>
    %80 = vector.extract_strided_slice %79 {offsets = [0, 0], sizes = [8, 32], strides = [1, 1]} : vector<8x96xf32> to vector<8x32xf32>
    %cst_59 = arith.constant 0.000000e+00 : f32
    %81 = vector.broadcast %cst_59 : f32 to vector<8x32xf32>
    %82 = arith.subf %81, %80 : vector<8x32xf32>
    %83 = math.exp %82 : vector<8x32xf32>
    %cst_60 = arith.constant 1.000000e+00 : f32
    %84 = vector.broadcast %cst_60 : f32 to vector<8x32xf32>
    %85 = arith.addf %84, %83 : vector<8x32xf32>
    %86 = tpu.reciprocal %85 {approx = true} : vector<8x32xf32> -> vector<8x32xf32>
    %87 = vector.extract_strided_slice %79 {offsets = [0, 32], sizes = [8, 32], strides = [1, 1]} : vector<8x96xf32> to vector<8x32xf32>
    %cst_61 = arith.constant 0.000000e+00 : f32
    %88 = vector.broadcast %cst_61 : f32 to vector<8x32xf32>
    %89 = arith.subf %88, %87 : vector<8x32xf32>
    %90 = math.exp %89 : vector<8x32xf32>
    %cst_62 = arith.constant 1.000000e+00 : f32
    %91 = vector.broadcast %cst_62 : f32 to vector<8x32xf32>
    %92 = arith.addf %91, %90 : vector<8x32xf32>
    %93 = tpu.reciprocal %92 {approx = true} : vector<8x32xf32> -> vector<8x32xf32>
    %94 = vector.extract_strided_slice %79 {offsets = [0, 64], sizes = [8, 32], strides = [1, 1]} : vector<8x96xf32> to vector<8x32xf32>
    %95 = math.tanh %94 : vector<8x32xf32>
    %96 = arith.mulf %86, %95 : vector<8x32xf32>
    %97 = arith.addf %96, %75 : vector<8x32xf32>
    %cst_63 = arith.constant 0.000000e+00 : f32
    %98 = vector.broadcast %cst_63 : f32 to vector<8x1xf32>
    %99 = arith.cmpf ogt, %31, %98 : vector<8x1xf32>
    %100 = vector.shape_cast %99 : vector<8x1xi1> to vector<8x1xi1>
    %101 = vector.broadcast %100 : vector<8x1xi1> to vector<8x32xi1>
    %102 = arith.select %101, %97, %75 : vector<8x32xi1>, vector<8x32xf32>
    %cst_64 = arith.constant 0.000000e+00 : f32
    %103 = vector.broadcast %cst_64 : f32 to vector<8x1xf32>
    %104 = arith.cmpf ogt, %31, %103 : vector<8x1xf32>
    %105 = math.tanh %97 : vector<8x32xf32>
    %106 = arith.mulf %93, %105 : vector<8x32xf32>
    %107 = vector.shape_cast %104 : vector<8x1xi1> to vector<8x1xi1>
    %108 = vector.broadcast %107 : vector<8x1xi1> to vector<8x32xi1>
    %109 = arith.select %108, %106, %35 : vector<8x32xi1>, vector<8x32xf32>
    %110 = tpu.concatenate %109, %102 in 1 : vector<8x32xf32>, vector<8x32xf32> -> vector<8x64xf32>
    %c0_65 = arith.constant 0 : index
    %c0_66 = arith.constant 0 : index
    %111 = vector.load %arg16[%c0_65, %c0_66] : memref<8x64xf32, #tpu.memory_space<vmem>>, vector<8x64xf32>
    tpu.vector_store %arg16[%c0_65, %c0_66], %110 {strides = array<i32>} : memref<8x64xf32, #tpu.memory_space<vmem>>, vector<8x64xf32>,
    %c0_67 = arith.constant 0 : index
    %c0_68 = arith.constant 0 : index
    %112 = vector.load %arg17[%c0_67, %c0_68] : memref<8x96xf32, #tpu.memory_space<vmem>>, vector<8x96xf32>
    tpu.vector_store %arg17[%c0_67, %c0_68], %73 {strides = array<i32>} : memref<8x96xf32, #tpu.memory_space<vmem>>, vector<8x96xf32>,
    %c0_69 = arith.constant 0 : index
    %c1 = arith.constant 1 : index
    %c0_70 = arith.constant 0 : index
    %c0_71 = arith.constant 0 : index
    %113 = vector.load %arg3[%c0_69, %c1, %c0_70, %c0_71] : memref<1x3x8x1xf32, #tpu.memory_space<vmem>>, vector<1x1x8x1xf32>
    %114 = vector.shape_cast %113 : vector<1x1x8x1xf32> to vector<8x1xf32>
    %c0_72 = arith.constant 0 : index
    %c1_73 = arith.constant 1 : index
    %c0_74 = arith.constant 0 : index
    %c0_75 = arith.constant 0 : index
    %115 = vector.load %arg4[%c0_72, %c1_73, %c0_74, %c0_75] : memref<1x3x8x1xf32, #tpu.memory_space<vmem>>, vector<1x1x8x1xf32>
    %116 = vector.shape_cast %115 : vector<1x1x8x1xf32> to vector<8x1xf32>
    %c0_76 = arith.constant 0 : index
    %c0_77 = arith.constant 0 : index
    %117 = vector.load %arg16[%c0_76, %c0_77] : memref<8x64xf32, #tpu.memory_space<vmem>>, vector<8x64xf32>
    %118 = vector.extract_strided_slice %117 {offsets = [0, 0], sizes = [8, 32], strides = [1, 1]} : vector<8x64xf32> to vector<8x32xf32>
    %119 = vector.extract_strided_slice %117 {offsets = [0, 32], sizes = [8, 32], strides = [1, 1]} : vector<8x64xf32> to vector<8x32xf32>
    %120 = arith.truncf %117 : vector<8x64xf32> to vector<8x64xbf16>
    %cst_78 = arith.constant dense<0.000000e+00> : vector<8x64xf32>
    %121 = tpu.matmul %1, %120, %cst_78 {dimension_numbers = #tpu.dot_dimension_numbers<[1], [0], [0], [1], [0, 0, 1, 1], [], []>} : vector<8x8xbf16>, vector<8x64xbf16>, vector<8x64xf32> -> vector<8x64xf32>
    %cst_79 = arith.constant 0.000000e+00 : f32
    %122 = vector.broadcast %cst_79 : f32 to vector<8x1xf32>
    %123 = arith.cmpf ogt, %116, %122 : vector<8x1xf32>
    %cst_80 = arith.constant 0.000000e+00 : f32
    %124 = vector.shape_cast %123 : vector<8x1xi1> to vector<8x1xi1>
    %125 = vector.broadcast %124 : vector<8x1xi1> to vector<8x64xi1>
    %126 = vector.broadcast %cst_80 : f32 to vector<8x64xf32>
    %127 = arith.select %125, %121, %126 : vector<8x64xi1>, vector<8x64xf32>
    %128 = vector.extract_strided_slice %127 {offsets = [0, 0], sizes = [8, 32], strides = [1, 1]} : vector<8x64xf32> to vector<8x32xf32>
    %129 = vector.extract_strided_slice %127 {offsets = [0, 32], sizes = [8, 32], strides = [1, 1]} : vector<8x64xf32> to vector<8x32xf32>
    %130 = vector.broadcast %5 : vector<8x1xf32> to vector<8x32xf32>
    %131 = arith.mulf %130, %128 : vector<8x32xf32>
    %132 = arith.subf %128, %131 : vector<8x32xf32>
    %133 = tpu.concatenate %132, %131 in 1 : vector<8x32xf32>, vector<8x32xf32> -> vector<8x64xf32>
    %134 = arith.truncf %133 : vector<8x64xf32> to vector<8x64xbf16>
    %cst_81 = arith.constant dense<0.000000e+00> : vector<8x128xf32>
    %135 = tpu.matmul %134, %27, %cst_81 {dimension_numbers = #tpu.dot_dimension_numbers<[1], [0], [0], [1], [0, 0, 1, 1], [], []>} : vector<8x64xbf16>, vector<64x128xbf16>, vector<8x128xf32> -> vector<8x128xf32>
    %c0_82 = arith.constant 0 : index
    %c0_83 = arith.constant 0 : index
    %136 = vector.load %arg19[%c0_82, %c0_83] : memref<8x32xf32, #tpu.memory_space<vmem>>, vector<8x32xf32>
    %137 = vector.extract_strided_slice %135 {offsets = [0, 96], sizes = [8, 32], strides = [1, 1]} : vector<8x128xf32> to vector<8x32xf32>
    %138 = arith.addf %136, %137 : vector<8x32xf32>
    %cst_84 = arith.constant 0.000000e+00 : f32
    %139 = vector.broadcast %cst_84 : f32 to vector<8x32xf32>
    %140 = arith.subf %139, %138 : vector<8x32xf32>
    %141 = math.exp %140 : vector<8x32xf32>
    %cst_85 = arith.constant 1.000000e+00 : f32
    %142 = vector.broadcast %cst_85 : f32 to vector<8x32xf32>
    %143 = arith.addf %142, %141 : vector<8x32xf32>
    %144 = tpu.reciprocal %143 {approx = true} : vector<8x32xf32> -> vector<8x32xf32>
    %cst_86 = arith.constant -1.000000e+14 : f32
    %cst_87 = arith.constant 1.000000e+14 : f32
    %145 = vector.broadcast %cst_86 : f32 to vector<8x32xf32>
    %146 = arith.maximumf %145, %129 : vector<8x32xf32>
    %147 = vector.broadcast %cst_87 : f32 to vector<8x32xf32>
    %148 = arith.minimumf %147, %146 : vector<8x32xf32>
    %149 = arith.mulf %144, %148 : vector<8x32xf32>
    %150 = vector.extract_strided_slice %135 {offsets = [0, 0], sizes = [8, 96], strides = [1, 1]} : vector<8x128xf32> to vector<8x96xf32>
    %151 = tpu.concatenate %150, %149 in 1 : vector<8x96xf32>, vector<8x32xf32> -> vector<8x128xf32>
    %152 = arith.truncf %151 : vector<8x128xf32> to vector<8x128xbf16>
    %cst_88 = arith.constant dense<0.000000e+00> : vector<8x128xf32>
    %153 = tpu.matmul %3, %152, %cst_88 {dimension_numbers = #tpu.dot_dimension_numbers<[1], [0], [0], [1], [0, 0, 1, 1], [], []>} : vector<8x8xbf16>, vector<8x128xbf16>, vector<8x128xf32> -> vector<8x128xf32>
    %c0_89 = arith.constant 0 : index
    %c0_90 = arith.constant 0 : index
    %154 = vector.load %arg17[%c0_89, %c0_90] : memref<8x96xf32, #tpu.memory_space<vmem>>, vector<8x96xf32>
    %155 = vector.extract_strided_slice %153 {offsets = [0, 0], sizes = [8, 96], strides = [1, 1]} : vector<8x128xf32> to vector<8x96xf32>
    %156 = arith.addf %154, %155 : vector<8x96xf32>
    %157 = vector.extract_strided_slice %153 {offsets = [0, 96], sizes = [8, 32], strides = [1, 1]} : vector<8x128xf32> to vector<8x32xf32>
    %158 = arith.addf %119, %157 : vector<8x32xf32>
    %c0_91 = arith.constant 0 : index
    %c0_92 = arith.constant 0 : index
    %159 = vector.load %arg18[%c0_91, %c0_92] : memref<8x96xf32, #tpu.memory_space<vmem>>, vector<8x96xf32>
    %160 = arith.addf %159, %156 : vector<8x96xf32>
    %161 = vector.broadcast %29 : vector<1x96xf32> to vector<8x96xf32>
    %162 = arith.addf %160, %161 : vector<8x96xf32>
    %163 = vector.extract_strided_slice %162 {offsets = [0, 0], sizes = [8, 32], strides = [1, 1]} : vector<8x96xf32> to vector<8x32xf32>
    %cst_93 = arith.constant 0.000000e+00 : f32
    %164 = vector.broadcast %cst_93 : f32 to vector<8x32xf32>
    %165 = arith.subf %164, %163 : vector<8x32xf32>
    %166 = math.exp %165 : vector<8x32xf32>
    %cst_94 = arith.constant 1.000000e+00 : f32
    %167 = vector.broadcast %cst_94 : f32 to vector<8x32xf32>
    %168 = arith.addf %167, %166 : vector<8x32xf32>
    %169 = tpu.reciprocal %168 {approx = true} : vector<8x32xf32> -> vector<8x32xf32>
    %170 = vector.extract_strided_slice %162 {offsets = [0, 32], sizes = [8, 32], strides = [1, 1]} : vector<8x96xf32> to vector<8x32xf32>
    %cst_95 = arith.constant 0.000000e+00 : f32
    %171 = vector.broadcast %cst_95 : f32 to vector<8x32xf32>
    %172 = arith.subf %171, %170 : vector<8x32xf32>
    %173 = math.exp %172 : vector<8x32xf32>
    %cst_96 = arith.constant 1.000000e+00 : f32
    %174 = vector.broadcast %cst_96 : f32 to vector<8x32xf32>
    %175 = arith.addf %174, %173 : vector<8x32xf32>
    %176 = tpu.reciprocal %175 {approx = true} : vector<8x32xf32> -> vector<8x32xf32>
    %177 = vector.extract_strided_slice %162 {offsets = [0, 64], sizes = [8, 32], strides = [1, 1]} : vector<8x96xf32> to vector<8x32xf32>
    %178 = math.tanh %177 : vector<8x32xf32>
    %179 = arith.mulf %169, %178 : vector<8x32xf32>
    %180 = arith.addf %179, %158 : vector<8x32xf32>
    %cst_97 = arith.constant 0.000000e+00 : f32
    %181 = vector.broadcast %cst_97 : f32 to vector<8x1xf32>
    %182 = arith.cmpf ogt, %114, %181 : vector<8x1xf32>
    %183 = vector.shape_cast %182 : vector<8x1xi1> to vector<8x1xi1>
    %184 = vector.broadcast %183 : vector<8x1xi1> to vector<8x32xi1>
    %185 = arith.select %184, %180, %158 : vector<8x32xi1>, vector<8x32xf32>
    %cst_98 = arith.constant 0.000000e+00 : f32
    %186 = vector.broadcast %cst_98 : f32 to vector<8x1xf32>
    %187 = arith.cmpf ogt, %114, %186 : vector<8x1xf32>
    %188 = math.tanh %180 : vector<8x32xf32>
    %189 = arith.mulf %176, %188 : vector<8x32xf32>
    %190 = vector.shape_cast %187 : vector<8x1xi1> to vector<8x1xi1>
    %191 = vector.broadcast %190 : vector<8x1xi1> to vector<8x32xi1>
    %192 = arith.select %191, %189, %118 : vector<8x32xi1>, vector<8x32xf32>
    %193 = tpu.concatenate %192, %185 in 1 : vector<8x32xf32>, vector<8x32xf32> -> vector<8x64xf32>
    %c0_99 = arith.constant 0 : index
    %c0_100 = arith.constant 0 : index
    %194 = vector.load %arg16[%c0_99, %c0_100] : memref<8x64xf32, #tpu.memory_space<vmem>>, vector<8x64xf32>
    tpu.vector_store %arg16[%c0_99, %c0_100], %193 {strides = array<i32>} : memref<8x64xf32, #tpu.memory_space<vmem>>, vector<8x64xf32>,
    %c0_101 = arith.constant 0 : index
    %c0_102 = arith.constant 0 : index
    %195 = vector.load %arg17[%c0_101, %c0_102] : memref<8x96xf32, #tpu.memory_space<vmem>>, vector<8x96xf32>
    tpu.vector_store %arg17[%c0_101, %c0_102], %156 {strides = array<i32>} : memref<8x96xf32, #tpu.memory_space<vmem>>, vector<8x96xf32>,
    %c0_103 = arith.constant 0 : index
    %c2 = arith.constant 2 : index
    %c0_104 = arith.constant 0 : index
    %c0_105 = arith.constant 0 : index
    %196 = vector.load %arg3[%c0_103, %c2, %c0_104, %c0_105] : memref<1x3x8x1xf32, #tpu.memory_space<vmem>>, vector<1x1x8x1xf32>
    %197 = vector.shape_cast %196 : vector<1x1x8x1xf32> to vector<8x1xf32>
    %c0_106 = arith.constant 0 : index
    %c2_107 = arith.constant 2 : index
    %c0_108 = arith.constant 0 : index
    %c0_109 = arith.constant 0 : index
    %198 = vector.load %arg4[%c0_106, %c2_107, %c0_108, %c0_109] : memref<1x3x8x1xf32, #tpu.memory_space<vmem>>, vector<1x1x8x1xf32>
    %199 = vector.shape_cast %198 : vector<1x1x8x1xf32> to vector<8x1xf32>
    %c0_110 = arith.constant 0 : index
    %c0_111 = arith.constant 0 : index
    %200 = vector.load %arg16[%c0_110, %c0_111] : memref<8x64xf32, #tpu.memory_space<vmem>>, vector<8x64xf32>
    %201 = vector.extract_strided_slice %200 {offsets = [0, 0], sizes = [8, 32], strides = [1, 1]} : vector<8x64xf32> to vector<8x32xf32>
    %202 = vector.extract_strided_slice %200 {offsets = [0, 32], sizes = [8, 32], strides = [1, 1]} : vector<8x64xf32> to vector<8x32xf32>
    %203 = arith.truncf %200 : vector<8x64xf32> to vector<8x64xbf16>
    %cst_112 = arith.constant dense<0.000000e+00> : vector<8x64xf32>
    %204 = tpu.matmul %1, %203, %cst_112 {dimension_numbers = #tpu.dot_dimension_numbers<[1], [0], [0], [1], [0, 0, 1, 1], [], []>} : vector<8x8xbf16>, vector<8x64xbf16>, vector<8x64xf32> -> vector<8x64xf32>
    %cst_113 = arith.constant 0.000000e+00 : f32
    %205 = vector.broadcast %cst_113 : f32 to vector<8x1xf32>
    %206 = arith.cmpf ogt, %199, %205 : vector<8x1xf32>
    %cst_114 = arith.constant 0.000000e+00 : f32
    %207 = vector.shape_cast %206 : vector<8x1xi1> to vector<8x1xi1>
    %208 = vector.broadcast %207 : vector<8x1xi1> to vector<8x64xi1>
    %209 = vector.broadcast %cst_114 : f32 to vector<8x64xf32>
    %210 = arith.select %208, %204, %209 : vector<8x64xi1>, vector<8x64xf32>
    %211 = vector.extract_strided_slice %210 {offsets = [0, 0], sizes = [8, 32], strides = [1, 1]} : vector<8x64xf32> to vector<8x32xf32>
    %212 = vector.extract_strided_slice %210 {offsets = [0, 32], sizes = [8, 32], strides = [1, 1]} : vector<8x64xf32> to vector<8x32xf32>
    %213 = vector.broadcast %5 : vector<8x1xf32> to vector<8x32xf32>
    %214 = arith.mulf %213, %211 : vector<8x32xf32>
    %215 = arith.subf %211, %214 : vector<8x32xf32>
    %216 = tpu.concatenate %215, %214 in 1 : vector<8x32xf32>, vector<8x32xf32> -> vector<8x64xf32>
    %217 = arith.truncf %216 : vector<8x64xf32> to vector<8x64xbf16>
    %cst_115 = arith.constant dense<0.000000e+00> : vector<8x128xf32>
    %218 = tpu.matmul %217, %27, %cst_115 {dimension_numbers = #tpu.dot_dimension_numbers<[1], [0], [0], [1], [0, 0, 1, 1], [], []>} : vector<8x64xbf16>, vector<64x128xbf16>, vector<8x128xf32> -> vector<8x128xf32>
    %c0_116 = arith.constant 0 : index
    %c0_117 = arith.constant 0 : index
    %219 = vector.load %arg19[%c0_116, %c0_117] : memref<8x32xf32, #tpu.memory_space<vmem>>, vector<8x32xf32>
    %220 = vector.extract_strided_slice %218 {offsets = [0, 96], sizes = [8, 32], strides = [1, 1]} : vector<8x128xf32> to vector<8x32xf32>
    %221 = arith.addf %219, %220 : vector<8x32xf32>
    %cst_118 = arith.constant 0.000000e+00 : f32
    %222 = vector.broadcast %cst_118 : f32 to vector<8x32xf32>
    %223 = arith.subf %222, %221 : vector<8x32xf32>
    %224 = math.exp %223 : vector<8x32xf32>
    %cst_119 = arith.constant 1.000000e+00 : f32
    %225 = vector.broadcast %cst_119 : f32 to vector<8x32xf32>
    %226 = arith.addf %225, %224 : vector<8x32xf32>
    %227 = tpu.reciprocal %226 {approx = true} : vector<8x32xf32> -> vector<8x32xf32>
    %cst_120 = arith.constant -1.000000e+14 : f32
    %cst_121 = arith.constant 1.000000e+14 : f32
    %228 = vector.broadcast %cst_120 : f32 to vector<8x32xf32>
    %229 = arith.maximumf %228, %212 : vector<8x32xf32>
    %230 = vector.broadcast %cst_121 : f32 to vector<8x32xf32>
    %231 = arith.minimumf %230, %229 : vector<8x32xf32>
    %232 = arith.mulf %227, %231 : vector<8x32xf32>
    %233 = vector.extract_strided_slice %218 {offsets = [0, 0], sizes = [8, 96], strides = [1, 1]} : vector<8x128xf32> to vector<8x96xf32>
    %234 = tpu.concatenate %233, %232 in 1 : vector<8x96xf32>, vector<8x32xf32> -> vector<8x128xf32>
    %235 = arith.truncf %234 : vector<8x128xf32> to vector<8x128xbf16>
    %cst_122 = arith.constant dense<0.000000e+00> : vector<8x128xf32>
    %236 = tpu.matmul %3, %235, %cst_122 {dimension_numbers = #tpu.dot_dimension_numbers<[1], [0], [0], [1], [0, 0, 1, 1], [], []>} : vector<8x8xbf16>, vector<8x128xbf16>, vector<8x128xf32> -> vector<8x128xf32>
    %c0_123 = arith.constant 0 : index
    %c0_124 = arith.constant 0 : index
    %237 = vector.load %arg17[%c0_123, %c0_124] : memref<8x96xf32, #tpu.memory_space<vmem>>, vector<8x96xf32>
    %238 = vector.extract_strided_slice %236 {offsets = [0, 0], sizes = [8, 96], strides = [1, 1]} : vector<8x128xf32> to vector<8x96xf32>
    %239 = arith.addf %237, %238 : vector<8x96xf32>
    %240 = vector.extract_strided_slice %236 {offsets = [0, 96], sizes = [8, 32], strides = [1, 1]} : vector<8x128xf32> to vector<8x32xf32>
    %241 = arith.addf %202, %240 : vector<8x32xf32>
    %c0_125 = arith.constant 0 : index
    %c0_126 = arith.constant 0 : index
    %242 = vector.load %arg18[%c0_125, %c0_126] : memref<8x96xf32, #tpu.memory_space<vmem>>, vector<8x96xf32>
    %243 = arith.addf %242, %239 : vector<8x96xf32>
    %244 = vector.broadcast %29 : vector<1x96xf32> to vector<8x96xf32>
    %245 = arith.addf %243, %244 : vector<8x96xf32>
    %246 = vector.extract_strided_slice %245 {offsets = [0, 0], sizes = [8, 32], strides = [1, 1]} : vector<8x96xf32> to vector<8x32xf32>
    %cst_127 = arith.constant 0.000000e+00 : f32
    %247 = vector.broadcast %cst_127 : f32 to vector<8x32xf32>
    %248 = arith.subf %247, %246 : vector<8x32xf32>
    %249 = math.exp %248 : vector<8x32xf32>
    %cst_128 = arith.constant 1.000000e+00 : f32
    %250 = vector.broadcast %cst_128 : f32 to vector<8x32xf32>
    %251 = arith.addf %250, %249 : vector<8x32xf32>
    %252 = tpu.reciprocal %251 {approx = true} : vector<8x32xf32> -> vector<8x32xf32>
    %253 = vector.extract_strided_slice %245 {offsets = [0, 32], sizes = [8, 32], strides = [1, 1]} : vector<8x96xf32> to vector<8x32xf32>
    %cst_129 = arith.constant 0.000000e+00 : f32
    %254 = vector.broadcast %cst_129 : f32 to vector<8x32xf32>
    %255 = arith.subf %254, %253 : vector<8x32xf32>
    %256 = math.exp %255 : vector<8x32xf32>
    %cst_130 = arith.constant 1.000000e+00 : f32
    %257 = vector.broadcast %cst_130 : f32 to vector<8x32xf32>
    %258 = arith.addf %257, %256 : vector<8x32xf32>
    %259 = tpu.reciprocal %258 {approx = true} : vector<8x32xf32> -> vector<8x32xf32>
    %260 = vector.extract_strided_slice %245 {offsets = [0, 64], sizes = [8, 32], strides = [1, 1]} : vector<8x96xf32> to vector<8x32xf32>
    %261 = math.tanh %260 : vector<8x32xf32>
    %262 = arith.mulf %252, %261 : vector<8x32xf32>
    %263 = arith.addf %262, %241 : vector<8x32xf32>
    %cst_131 = arith.constant 0.000000e+00 : f32
    %264 = vector.broadcast %cst_131 : f32 to vector<8x1xf32>
    %265 = arith.cmpf ogt, %197, %264 : vector<8x1xf32>
    %266 = vector.shape_cast %265 : vector<8x1xi1> to vector<8x1xi1>
    %267 = vector.broadcast %266 : vector<8x1xi1> to vector<8x32xi1>
    %268 = arith.select %267, %263, %241 : vector<8x32xi1>, vector<8x32xf32>
    %cst_132 = arith.constant 0.000000e+00 : f32
    %269 = vector.broadcast %cst_132 : f32 to vector<8x1xf32>
    %270 = arith.cmpf ogt, %197, %269 : vector<8x1xf32>
    %271 = math.tanh %263 : vector<8x32xf32>
    %272 = arith.mulf %259, %271 : vector<8x32xf32>
    %273 = vector.shape_cast %270 : vector<8x1xi1> to vector<8x1xi1>
    %274 = vector.broadcast %273 : vector<8x1xi1> to vector<8x32xi1>
    %275 = arith.select %274, %272, %201 : vector<8x32xi1>, vector<8x32xf32>
    %276 = tpu.concatenate %275, %268 in 1 : vector<8x32xf32>, vector<8x32xf32> -> vector<8x64xf32>
    %c0_133 = arith.constant 0 : index
    %c0_134 = arith.constant 0 : index
    %277 = vector.load %arg16[%c0_133, %c0_134] : memref<8x64xf32, #tpu.memory_space<vmem>>, vector<8x64xf32>
    tpu.vector_store %arg16[%c0_133, %c0_134], %276 {strides = array<i32>} : memref<8x64xf32, #tpu.memory_space<vmem>>, vector<8x64xf32>,
    %c0_135 = arith.constant 0 : index
    %c0_136 = arith.constant 0 : index
    %278 = vector.load %arg17[%c0_135, %c0_136] : memref<8x96xf32, #tpu.memory_space<vmem>>, vector<8x96xf32>
    tpu.vector_store %arg17[%c0_135, %c0_136], %239 {strides = array<i32>} : memref<8x96xf32, #tpu.memory_space<vmem>>, vector<8x96xf32>,
    %c0_137 = arith.constant 0 : index
    %c0_138 = arith.constant 0 : index
    %279 = vector.load %arg16[%c0_137, %c0_138] : memref<8x64xf32, #tpu.memory_space<vmem>>, vector<8x32xf32>
    %c0_139 = arith.constant 0 : index
    %c0_140 = arith.constant 0 : index
    %c0_141 = arith.constant 0 : index
    %280 = vector.load %arg11[%c0_139, %c0_140, %c0_141] : memref<1x32x128xbf16, #tpu.memory_space<vmem>>, vector<1x32x128xbf16>
    %281 = vector.shape_cast %280 : vector<1x32x128xbf16> to vector<32x128xbf16>
    %c0_142 = arith.constant 0 : index
    %c0_143 = arith.constant 0 : index
    %c0_144 = arith.constant 0 : index
    %282 = vector.load %arg14[%c0_142, %c0_143, %c0_144] : memref<1x1x32xf32, #tpu.memory_space<vmem>>, vector<1x1x32xf32>
    %283 = vector.shape_cast %282 : vector<1x1x32xf32> to vector<1x32xf32>
    %284 = arith.truncf %279 : vector<8x32xf32> to vector<8x32xbf16>
    %cst_145 = arith.constant dense<0.000000e+00> : vector<8x128xf32>
    %285 = tpu.matmul %284, %281, %cst_145 {dimension_numbers = #tpu.dot_dimension_numbers<[1], [0], [0], [1], [0, 0, 1, 1], [], []>} : vector<8x32xbf16>, vector<32x128xbf16>, vector<8x128xf32> -> vector<8x128xf32>
    %286 = vector.extract_strided_slice %285 {offsets = [0, 0], sizes = [8, 96], strides = [1, 1]} : vector<8x128xf32> to vector<8x96xf32>
    %c0_146 = arith.constant 0 : index
    %c0_147 = arith.constant 0 : index
    %287 = vector.load %arg18[%c0_146, %c0_147] : memref<8x96xf32, #tpu.memory_space<vmem>>, vector<8x96xf32>
    tpu.vector_store %arg18[%c0_146, %c0_147], %286 {strides = array<i32>} : memref<8x96xf32, #tpu.memory_space<vmem>>, vector<8x96xf32>,
    %288 = vector.extract_strided_slice %285 {offsets = [0, 96], sizes = [8, 32], strides = [1, 1]} : vector<8x128xf32> to vector<8x32xf32>
    %289 = arith.truncf %288 : vector<8x32xf32> to vector<8x32xbf16>
    %cst_148 = arith.constant dense<0.000000e+00> : vector<8x32xf32>
    %290 = tpu.matmul %1, %289, %cst_148 {dimension_numbers = #tpu.dot_dimension_numbers<[1], [0], [0], [1], [0, 0, 1, 1], [], []>} : vector<8x8xbf16>, vector<8x32xbf16>, vector<8x32xf32> -> vector<8x32xf32>
    %291 = vector.broadcast %283 : vector<1x32xf32> to vector<8x32xf32>
    %292 = arith.addf %290, %291 : vector<8x32xf32>
    %c0_149 = arith.constant 0 : index
    %c0_150 = arith.constant 0 : index
    %293 = vector.load %arg19[%c0_149, %c0_150] : memref<8x32xf32, #tpu.memory_space<vmem>>, vector<8x32xf32>
    tpu.vector_store %arg19[%c0_149, %c0_150], %292 {strides = array<i32>} : memref<8x32xf32, #tpu.memory_space<vmem>>, vector<8x32xf32>,
    %cst_151 = arith.constant 0.000000e+00 : f32
    %294 = vector.broadcast %cst_151 : f32 to vector<8x64xf32>
    %c0_152 = arith.constant 0 : index
    %c0_153 = arith.constant 0 : index
    %295 = vector.load %arg16[%c0_152, %c0_153] : memref<8x64xf32, #tpu.memory_space<vmem>>, vector<8x64xf32>
    tpu.vector_store %arg16[%c0_152, %c0_153], %294 {strides = array<i32>} : memref<8x64xf32, #tpu.memory_space<vmem>>, vector<8x64xf32>,
    %cst_154 = arith.constant 0.000000e+00 : f32
    %296 = vector.broadcast %cst_154 : f32 to vector<8x96xf32>
    %c0_155 = arith.constant 0 : index
    %c0_156 = arith.constant 0 : index
    %297 = vector.load %arg17[%c0_155, %c0_156] : memref<8x96xf32, #tpu.memory_space<vmem>>, vector<8x96xf32>
    tpu.vector_store %arg17[%c0_155, %c0_156], %296 {strides = array<i32>} : memref<8x96xf32, #tpu.memory_space<vmem>>, vector<8x96xf32>,
    %c0_157 = arith.constant 0 : index
    %c0_158 = arith.constant 0 : index
    %c0_159 = arith.constant 0 : index
    %298 = vector.load %arg12[%c0_157, %c0_158, %c0_159] : memref<1x64x128xbf16, #tpu.memory_space<vmem>>, vector<1x64x128xbf16>
    %299 = vector.shape_cast %298 : vector<1x64x128xbf16> to vector<64x128xbf16>
    %c0_160 = arith.constant 0 : index
    %c0_161 = arith.constant 0 : index
    %c0_162 = arith.constant 0 : index
    %300 = vector.load %arg13[%c0_160, %c0_161, %c0_162] : memref<1x1x96xf32, #tpu.memory_space<vmem>>, vector<1x1x96xf32>
    %301 = vector.shape_cast %300 : vector<1x1x96xf32> to vector<1x96xf32>
    %c0_163 = arith.constant 0 : index
    %c0_164 = arith.constant 0 : index
    %c0_165 = arith.constant 0 : index
    %c0_166 = arith.constant 0 : index
    %302 = vector.load %arg3[%c0_163, %c0_164, %c0_165, %c0_166] : memref<1x3x8x1xf32, #tpu.memory_space<vmem>>, vector<1x1x8x1xf32>
    %303 = vector.shape_cast %302 : vector<1x1x8x1xf32> to vector<8x1xf32>
    %c0_167 = arith.constant 0 : index
    %c0_168 = arith.constant 0 : index
    %c0_169 = arith.constant 0 : index
    %c0_170 = arith.constant 0 : index
    %304 = vector.load %arg4[%c0_167, %c0_168, %c0_169, %c0_170] : memref<1x3x8x1xf32, #tpu.memory_space<vmem>>, vector<1x1x8x1xf32>
    %305 = vector.shape_cast %304 : vector<1x1x8x1xf32> to vector<8x1xf32>
    %c0_171 = arith.constant 0 : index
    %c0_172 = arith.constant 0 : index
    %306 = vector.load %arg16[%c0_171, %c0_172] : memref<8x64xf32, #tpu.memory_space<vmem>>, vector<8x64xf32>
    %307 = vector.extract_strided_slice %306 {offsets = [0, 0], sizes = [8, 32], strides = [1, 1]} : vector<8x64xf32> to vector<8x32xf32>
    %308 = vector.extract_strided_slice %306 {offsets = [0, 32], sizes = [8, 32], strides = [1, 1]} : vector<8x64xf32> to vector<8x32xf32>
    %309 = arith.truncf %306 : vector<8x64xf32> to vector<8x64xbf16>
    %cst_173 = arith.constant dense<0.000000e+00> : vector<8x64xf32>
    %310 = tpu.matmul %1, %309, %cst_173 {dimension_numbers = #tpu.dot_dimension_numbers<[1], [0], [0], [1], [0, 0, 1, 1], [], []>} : vector<8x8xbf16>, vector<8x64xbf16>, vector<8x64xf32> -> vector<8x64xf32>
    %cst_174 = arith.constant 0.000000e+00 : f32
    %311 = vector.broadcast %cst_174 : f32 to vector<8x1xf32>
    %312 = arith.cmpf ogt, %305, %311 : vector<8x1xf32>
    %cst_175 = arith.constant 0.000000e+00 : f32
    %313 = vector.shape_cast %312 : vector<8x1xi1> to vector<8x1xi1>
    %314 = vector.broadcast %313 : vector<8x1xi1> to vector<8x64xi1>
    %315 = vector.broadcast %cst_175 : f32 to vector<8x64xf32>
    %316 = arith.select %314, %310, %315 : vector<8x64xi1>, vector<8x64xf32>
    %317 = vector.extract_strided_slice %316 {offsets = [0, 0], sizes = [8, 32], strides = [1, 1]} : vector<8x64xf32> to vector<8x32xf32>
    %318 = vector.extract_strided_slice %316 {offsets = [0, 32], sizes = [8, 32], strides = [1, 1]} : vector<8x64xf32> to vector<8x32xf32>
    %319 = vector.broadcast %5 : vector<8x1xf32> to vector<8x32xf32>
    %320 = arith.mulf %319, %317 : vector<8x32xf32>
    %321 = arith.subf %317, %320 : vector<8x32xf32>
    %322 = tpu.concatenate %321, %320 in 1 : vector<8x32xf32>, vector<8x32xf32> -> vector<8x64xf32>
    %323 = arith.truncf %322 : vector<8x64xf32> to vector<8x64xbf16>
    %cst_176 = arith.constant dense<0.000000e+00> : vector<8x128xf32>
    %324 = tpu.matmul %323, %299, %cst_176 {dimension_numbers = #tpu.dot_dimension_numbers<[1], [0], [0], [1], [0, 0, 1, 1], [], []>} : vector<8x64xbf16>, vector<64x128xbf16>, vector<8x128xf32> -> vector<8x128xf32>
    %c0_177 = arith.constant 0 : index
    %c0_178 = arith.constant 0 : index
    %325 = vector.load %arg19[%c0_177, %c0_178] : memref<8x32xf32, #tpu.memory_space<vmem>>, vector<8x32xf32>
    %326 = vector.extract_strided_slice %324 {offsets = [0, 96], sizes = [8, 32], strides = [1, 1]} : vector<8x128xf32> to vector<8x32xf32>
    %327 = arith.addf %325, %326 : vector<8x32xf32>
    %cst_179 = arith.constant 0.000000e+00 : f32
    %328 = vector.broadcast %cst_179 : f32 to vector<8x32xf32>
    %329 = arith.subf %328, %327 : vector<8x32xf32>
    %330 = math.exp %329 : vector<8x32xf32>
    %cst_180 = arith.constant 1.000000e+00 : f32
    %331 = vector.broadcast %cst_180 : f32 to vector<8x32xf32>
    %332 = arith.addf %331, %330 : vector<8x32xf32>
    %333 = tpu.reciprocal %332 {approx = true} : vector<8x32xf32> -> vector<8x32xf32>
    %cst_181 = arith.constant -1.000000e+14 : f32
    %cst_182 = arith.constant 1.000000e+14 : f32
    %334 = vector.broadcast %cst_181 : f32 to vector<8x32xf32>
    %335 = arith.maximumf %334, %318 : vector<8x32xf32>
    %336 = vector.broadcast %cst_182 : f32 to vector<8x32xf32>
    %337 = arith.minimumf %336, %335 : vector<8x32xf32>
    %338 = arith.mulf %333, %337 : vector<8x32xf32>
    %339 = vector.extract_strided_slice %324 {offsets = [0, 0], sizes = [8, 96], strides = [1, 1]} : vector<8x128xf32> to vector<8x96xf32>
    %340 = tpu.concatenate %339, %338 in 1 : vector<8x96xf32>, vector<8x32xf32> -> vector<8x128xf32>
    %341 = arith.truncf %340 : vector<8x128xf32> to vector<8x128xbf16>
    %cst_183 = arith.constant dense<0.000000e+00> : vector<8x128xf32>
    %342 = tpu.matmul %3, %341, %cst_183 {dimension_numbers = #tpu.dot_dimension_numbers<[1], [0], [0], [1], [0, 0, 1, 1], [], []>} : vector<8x8xbf16>, vector<8x128xbf16>, vector<8x128xf32> -> vector<8x128xf32>
    %c0_184 = arith.constant 0 : index
    %c0_185 = arith.constant 0 : index
    %343 = vector.load %arg17[%c0_184, %c0_185] : memref<8x96xf32, #tpu.memory_space<vmem>>, vector<8x96xf32>
    %344 = vector.extract_strided_slice %342 {offsets = [0, 0], sizes = [8, 96], strides = [1, 1]} : vector<8x128xf32> to vector<8x96xf32>
    %345 = arith.addf %343, %344 : vector<8x96xf32>
    %346 = vector.extract_strided_slice %342 {offsets = [0, 96], sizes = [8, 32], strides = [1, 1]} : vector<8x128xf32> to vector<8x32xf32>
    %347 = arith.addf %308, %346 : vector<8x32xf32>
    %c0_186 = arith.constant 0 : index
    %c0_187 = arith.constant 0 : index
    %348 = vector.load %arg18[%c0_186, %c0_187] : memref<8x96xf32, #tpu.memory_space<vmem>>, vector<8x96xf32>
    %349 = arith.addf %348, %345 : vector<8x96xf32>
    %350 = vector.broadcast %301 : vector<1x96xf32> to vector<8x96xf32>
    %351 = arith.addf %349, %350 : vector<8x96xf32>
    %352 = vector.extract_strided_slice %351 {offsets = [0, 0], sizes = [8, 32], strides = [1, 1]} : vector<8x96xf32> to vector<8x32xf32>
    %cst_188 = arith.constant 0.000000e+00 : f32
    %353 = vector.broadcast %cst_188 : f32 to vector<8x32xf32>
    %354 = arith.subf %353, %352 : vector<8x32xf32>
    %355 = math.exp %354 : vector<8x32xf32>
    %cst_189 = arith.constant 1.000000e+00 : f32
    %356 = vector.broadcast %cst_189 : f32 to vector<8x32xf32>
    %357 = arith.addf %356, %355 : vector<8x32xf32>
    %358 = tpu.reciprocal %357 {approx = true} : vector<8x32xf32> -> vector<8x32xf32>
    %359 = vector.extract_strided_slice %351 {offsets = [0, 32], sizes = [8, 32], strides = [1, 1]} : vector<8x96xf32> to vector<8x32xf32>
    %cst_190 = arith.constant 0.000000e+00 : f32
    %360 = vector.broadcast %cst_190 : f32 to vector<8x32xf32>
    %361 = arith.subf %360, %359 : vector<8x32xf32>
    %362 = math.exp %361 : vector<8x32xf32>
    %cst_191 = arith.constant 1.000000e+00 : f32
    %363 = vector.broadcast %cst_191 : f32 to vector<8x32xf32>
    %364 = arith.addf %363, %362 : vector<8x32xf32>
    %365 = tpu.reciprocal %364 {approx = true} : vector<8x32xf32> -> vector<8x32xf32>
    %366 = vector.extract_strided_slice %351 {offsets = [0, 64], sizes = [8, 32], strides = [1, 1]} : vector<8x96xf32> to vector<8x32xf32>
    %367 = math.tanh %366 : vector<8x32xf32>
    %368 = arith.mulf %358, %367 : vector<8x32xf32>
    %369 = arith.addf %368, %347 : vector<8x32xf32>
    %cst_192 = arith.constant 0.000000e+00 : f32
    %370 = vector.broadcast %cst_192 : f32 to vector<8x1xf32>
    %371 = arith.cmpf ogt, %303, %370 : vector<8x1xf32>
    %372 = vector.shape_cast %371 : vector<8x1xi1> to vector<8x1xi1>
    %373 = vector.broadcast %372 : vector<8x1xi1> to vector<8x32xi1>
    %374 = arith.select %373, %369, %347 : vector<8x32xi1>, vector<8x32xf32>
    %cst_193 = arith.constant 0.000000e+00 : f32
    %375 = vector.broadcast %cst_193 : f32 to vector<8x1xf32>
    %376 = arith.cmpf ogt, %303, %375 : vector<8x1xf32>
    %377 = math.tanh %369 : vector<8x32xf32>
    %378 = arith.mulf %365, %377 : vector<8x32xf32>
    %379 = vector.shape_cast %376 : vector<8x1xi1> to vector<8x1xi1>
    %380 = vector.broadcast %379 : vector<8x1xi1> to vector<8x32xi1>
    %381 = arith.select %380, %378, %307 : vector<8x32xi1>, vector<8x32xf32>
    %382 = tpu.concatenate %381, %374 in 1 : vector<8x32xf32>, vector<8x32xf32> -> vector<8x64xf32>
    %c0_194 = arith.constant 0 : index
    %c0_195 = arith.constant 0 : index
    %383 = vector.load %arg16[%c0_194, %c0_195] : memref<8x64xf32, #tpu.memory_space<vmem>>, vector<8x64xf32>
    tpu.vector_store %arg16[%c0_194, %c0_195], %382 {strides = array<i32>} : memref<8x64xf32, #tpu.memory_space<vmem>>, vector<8x64xf32>,
    %c0_196 = arith.constant 0 : index
    %c0_197 = arith.constant 0 : index
    %384 = vector.load %arg17[%c0_196, %c0_197] : memref<8x96xf32, #tpu.memory_space<vmem>>, vector<8x96xf32>
    tpu.vector_store %arg17[%c0_196, %c0_197], %345 {strides = array<i32>} : memref<8x96xf32, #tpu.memory_space<vmem>>, vector<8x96xf32>,
    %c0_198 = arith.constant 0 : index
    %c1_199 = arith.constant 1 : index
    %c0_200 = arith.constant 0 : index
    %c0_201 = arith.constant 0 : index
    %385 = vector.load %arg3[%c0_198, %c1_199, %c0_200, %c0_201] : memref<1x3x8x1xf32, #tpu.memory_space<vmem>>, vector<1x1x8x1xf32>
    %386 = vector.shape_cast %385 : vector<1x1x8x1xf32> to vector<8x1xf32>
    %c0_202 = arith.constant 0 : index
    %c1_203 = arith.constant 1 : index
    %c0_204 = arith.constant 0 : index
    %c0_205 = arith.constant 0 : index
    %387 = vector.load %arg4[%c0_202, %c1_203, %c0_204, %c0_205] : memref<1x3x8x1xf32, #tpu.memory_space<vmem>>, vector<1x1x8x1xf32>
    %388 = vector.shape_cast %387 : vector<1x1x8x1xf32> to vector<8x1xf32>
    %c0_206 = arith.constant 0 : index
    %c0_207 = arith.constant 0 : index
    %389 = vector.load %arg16[%c0_206, %c0_207] : memref<8x64xf32, #tpu.memory_space<vmem>>, vector<8x64xf32>
    %390 = vector.extract_strided_slice %389 {offsets = [0, 0], sizes = [8, 32], strides = [1, 1]} : vector<8x64xf32> to vector<8x32xf32>
    %391 = vector.extract_strided_slice %389 {offsets = [0, 32], sizes = [8, 32], strides = [1, 1]} : vector<8x64xf32> to vector<8x32xf32>
    %392 = arith.truncf %389 : vector<8x64xf32> to vector<8x64xbf16>
    %cst_208 = arith.constant dense<0.000000e+00> : vector<8x64xf32>
    %393 = tpu.matmul %1, %392, %cst_208 {dimension_numbers = #tpu.dot_dimension_numbers<[1], [0], [0], [1], [0, 0, 1, 1], [], []>} : vector<8x8xbf16>, vector<8x64xbf16>, vector<8x64xf32> -> vector<8x64xf32>
    %cst_209 = arith.constant 0.000000e+00 : f32
    %394 = vector.broadcast %cst_209 : f32 to vector<8x1xf32>
    %395 = arith.cmpf ogt, %388, %394 : vector<8x1xf32>
    %cst_210 = arith.constant 0.000000e+00 : f32
    %396 = vector.shape_cast %395 : vector<8x1xi1> to vector<8x1xi1>
    %397 = vector.broadcast %396 : vector<8x1xi1> to vector<8x64xi1>
    %398 = vector.broadcast %cst_210 : f32 to vector<8x64xf32>
    %399 = arith.select %397, %393, %398 : vector<8x64xi1>, vector<8x64xf32>
    %400 = vector.extract_strided_slice %399 {offsets = [0, 0], sizes = [8, 32], strides = [1, 1]} : vector<8x64xf32> to vector<8x32xf32>
    %401 = vector.extract_strided_slice %399 {offsets = [0, 32], sizes = [8, 32], strides = [1, 1]} : vector<8x64xf32> to vector<8x32xf32>
    %402 = vector.broadcast %5 : vector<8x1xf32> to vector<8x32xf32>
    %403 = arith.mulf %402, %400 : vector<8x32xf32>
    %404 = arith.subf %400, %403 : vector<8x32xf32>
    %405 = tpu.concatenate %404, %403 in 1 : vector<8x32xf32>, vector<8x32xf32> -> vector<8x64xf32>
    %406 = arith.truncf %405 : vector<8x64xf32> to vector<8x64xbf16>
    %cst_211 = arith.constant dense<0.000000e+00> : vector<8x128xf32>
    %407 = tpu.matmul %406, %299, %cst_211 {dimension_numbers = #tpu.dot_dimension_numbers<[1], [0], [0], [1], [0, 0, 1, 1], [], []>} : vector<8x64xbf16>, vector<64x128xbf16>, vector<8x128xf32> -> vector<8x128xf32>
    %c0_212 = arith.constant 0 : index
    %c0_213 = arith.constant 0 : index
    %408 = vector.load %arg19[%c0_212, %c0_213] : memref<8x32xf32, #tpu.memory_space<vmem>>, vector<8x32xf32>
    %409 = vector.extract_strided_slice %407 {offsets = [0, 96], sizes = [8, 32], strides = [1, 1]} : vector<8x128xf32> to vector<8x32xf32>
    %410 = arith.addf %408, %409 : vector<8x32xf32>
    %cst_214 = arith.constant 0.000000e+00 : f32
    %411 = vector.broadcast %cst_214 : f32 to vector<8x32xf32>
    %412 = arith.subf %411, %410 : vector<8x32xf32>
    %413 = math.exp %412 : vector<8x32xf32>
    %cst_215 = arith.constant 1.000000e+00 : f32
    %414 = vector.broadcast %cst_215 : f32 to vector<8x32xf32>
    %415 = arith.addf %414, %413 : vector<8x32xf32>
    %416 = tpu.reciprocal %415 {approx = true} : vector<8x32xf32> -> vector<8x32xf32>
    %cst_216 = arith.constant -1.000000e+14 : f32
    %cst_217 = arith.constant 1.000000e+14 : f32
    %417 = vector.broadcast %cst_216 : f32 to vector<8x32xf32>
    %418 = arith.maximumf %417, %401 : vector<8x32xf32>
    %419 = vector.broadcast %cst_217 : f32 to vector<8x32xf32>
    %420 = arith.minimumf %419, %418 : vector<8x32xf32>
    %421 = arith.mulf %416, %420 : vector<8x32xf32>
    %422 = vector.extract_strided_slice %407 {offsets = [0, 0], sizes = [8, 96], strides = [1, 1]} : vector<8x128xf32> to vector<8x96xf32>
    %423 = tpu.concatenate %422, %421 in 1 : vector<8x96xf32>, vector<8x32xf32> -> vector<8x128xf32>
    %424 = arith.truncf %423 : vector<8x128xf32> to vector<8x128xbf16>
    %cst_218 = arith.constant dense<0.000000e+00> : vector<8x128xf32>
    %425 = tpu.matmul %3, %424, %cst_218 {dimension_numbers = #tpu.dot_dimension_numbers<[1], [0], [0], [1], [0, 0, 1, 1], [], []>} : vector<8x8xbf16>, vector<8x128xbf16>, vector<8x128xf32> -> vector<8x128xf32>
    %c0_219 = arith.constant 0 : index
    %c0_220 = arith.constant 0 : index
    %426 = vector.load %arg17[%c0_219, %c0_220] : memref<8x96xf32, #tpu.memory_space<vmem>>, vector<8x96xf32>
    %427 = vector.extract_strided_slice %425 {offsets = [0, 0], sizes = [8, 96], strides = [1, 1]} : vector<8x128xf32> to vector<8x96xf32>
    %428 = arith.addf %426, %427 : vector<8x96xf32>
    %429 = vector.extract_strided_slice %425 {offsets = [0, 96], sizes = [8, 32], strides = [1, 1]} : vector<8x128xf32> to vector<8x32xf32>
    %430 = arith.addf %391, %429 : vector<8x32xf32>
    %c0_221 = arith.constant 0 : index
    %c0_222 = arith.constant 0 : index
    %431 = vector.load %arg18[%c0_221, %c0_222] : memref<8x96xf32, #tpu.memory_space<vmem>>, vector<8x96xf32>
    %432 = arith.addf %431, %428 : vector<8x96xf32>
    %433 = vector.broadcast %301 : vector<1x96xf32> to vector<8x96xf32>
    %434 = arith.addf %432, %433 : vector<8x96xf32>
    %435 = vector.extract_strided_slice %434 {offsets = [0, 0], sizes = [8, 32], strides = [1, 1]} : vector<8x96xf32> to vector<8x32xf32>
    %cst_223 = arith.constant 0.000000e+00 : f32
    %436 = vector.broadcast %cst_223 : f32 to vector<8x32xf32>
    %437 = arith.subf %436, %435 : vector<8x32xf32>
    %438 = math.exp %437 : vector<8x32xf32>
    %cst_224 = arith.constant 1.000000e+00 : f32
    %439 = vector.broadcast %cst_224 : f32 to vector<8x32xf32>
    %440 = arith.addf %439, %438 : vector<8x32xf32>
    %441 = tpu.reciprocal %440 {approx = true} : vector<8x32xf32> -> vector<8x32xf32>
    %442 = vector.extract_strided_slice %434 {offsets = [0, 32], sizes = [8, 32], strides = [1, 1]} : vector<8x96xf32> to vector<8x32xf32>
    %cst_225 = arith.constant 0.000000e+00 : f32
    %443 = vector.broadcast %cst_225 : f32 to vector<8x32xf32>
    %444 = arith.subf %443, %442 : vector<8x32xf32>
    %445 = math.exp %444 : vector<8x32xf32>
    %cst_226 = arith.constant 1.000000e+00 : f32
    %446 = vector.broadcast %cst_226 : f32 to vector<8x32xf32>
    %447 = arith.addf %446, %445 : vector<8x32xf32>
    %448 = tpu.reciprocal %447 {approx = true} : vector<8x32xf32> -> vector<8x32xf32>
    %449 = vector.extract_strided_slice %434 {offsets = [0, 64], sizes = [8, 32], strides = [1, 1]} : vector<8x96xf32> to vector<8x32xf32>
    %450 = math.tanh %449 : vector<8x32xf32>
    %451 = arith.mulf %441, %450 : vector<8x32xf32>
    %452 = arith.addf %451, %430 : vector<8x32xf32>
    %cst_227 = arith.constant 0.000000e+00 : f32
    %453 = vector.broadcast %cst_227 : f32 to vector<8x1xf32>
    %454 = arith.cmpf ogt, %386, %453 : vector<8x1xf32>
    %455 = vector.shape_cast %454 : vector<8x1xi1> to vector<8x1xi1>
    %456 = vector.broadcast %455 : vector<8x1xi1> to vector<8x32xi1>
    %457 = arith.select %456, %452, %430 : vector<8x32xi1>, vector<8x32xf32>
    %cst_228 = arith.constant 0.000000e+00 : f32
    %458 = vector.broadcast %cst_228 : f32 to vector<8x1xf32>
    %459 = arith.cmpf ogt, %386, %458 : vector<8x1xf32>
    %460 = math.tanh %452 : vector<8x32xf32>
    %461 = arith.mulf %448, %460 : vector<8x32xf32>
    %462 = vector.shape_cast %459 : vector<8x1xi1> to vector<8x1xi1>
    %463 = vector.broadcast %462 : vector<8x1xi1> to vector<8x32xi1>
    %464 = arith.select %463, %461, %390 : vector<8x32xi1>, vector<8x32xf32>
    %465 = tpu.concatenate %464, %457 in 1 : vector<8x32xf32>, vector<8x32xf32> -> vector<8x64xf32>
    %c0_229 = arith.constant 0 : index
    %c0_230 = arith.constant 0 : index
    %466 = vector.load %arg16[%c0_229, %c0_230] : memref<8x64xf32, #tpu.memory_space<vmem>>, vector<8x64xf32>
    tpu.vector_store %arg16[%c0_229, %c0_230], %465 {strides = array<i32>} : memref<8x64xf32, #tpu.memory_space<vmem>>, vector<8x64xf32>,
    %c0_231 = arith.constant 0 : index
    %c0_232 = arith.constant 0 : index
    %467 = vector.load %arg17[%c0_231, %c0_232] : memref<8x96xf32, #tpu.memory_space<vmem>>, vector<8x96xf32>
    tpu.vector_store %arg17[%c0_231, %c0_232], %428 {strides = array<i32>} : memref<8x96xf32, #tpu.memory_space<vmem>>, vector<8x96xf32>,
    %c0_233 = arith.constant 0 : index
    %c2_234 = arith.constant 2 : index
    %c0_235 = arith.constant 0 : index
    %c0_236 = arith.constant 0 : index
    %468 = vector.load %arg3[%c0_233, %c2_234, %c0_235, %c0_236] : memref<1x3x8x1xf32, #tpu.memory_space<vmem>>, vector<1x1x8x1xf32>
    %469 = vector.shape_cast %468 : vector<1x1x8x1xf32> to vector<8x1xf32>
    %c0_237 = arith.constant 0 : index
    %c2_238 = arith.constant 2 : index
    %c0_239 = arith.constant 0 : index
    %c0_240 = arith.constant 0 : index
    %470 = vector.load %arg4[%c0_237, %c2_238, %c0_239, %c0_240] : memref<1x3x8x1xf32, #tpu.memory_space<vmem>>, vector<1x1x8x1xf32>
    %471 = vector.shape_cast %470 : vector<1x1x8x1xf32> to vector<8x1xf32>
    %c0_241 = arith.constant 0 : index
    %c0_242 = arith.constant 0 : index
    %472 = vector.load %arg16[%c0_241, %c0_242] : memref<8x64xf32, #tpu.memory_space<vmem>>, vector<8x64xf32>
    %473 = vector.extract_strided_slice %472 {offsets = [0, 0], sizes = [8, 32], strides = [1, 1]} : vector<8x64xf32> to vector<8x32xf32>
    %474 = vector.extract_strided_slice %472 {offsets = [0, 32], sizes = [8, 32], strides = [1, 1]} : vector<8x64xf32> to vector<8x32xf32>
    %475 = arith.truncf %472 : vector<8x64xf32> to vector<8x64xbf16>
    %cst_243 = arith.constant dense<0.000000e+00> : vector<8x64xf32>
    %476 = tpu.matmul %1, %475, %cst_243 {dimension_numbers = #tpu.dot_dimension_numbers<[1], [0], [0], [1], [0, 0, 1, 1], [], []>} : vector<8x8xbf16>, vector<8x64xbf16>, vector<8x64xf32> -> vector<8x64xf32>
    %cst_244 = arith.constant 0.000000e+00 : f32
    %477 = vector.broadcast %cst_244 : f32 to vector<8x1xf32>
    %478 = arith.cmpf ogt, %471, %477 : vector<8x1xf32>
    %cst_245 = arith.constant 0.000000e+00 : f32
    %479 = vector.shape_cast %478 : vector<8x1xi1> to vector<8x1xi1>
    %480 = vector.broadcast %479 : vector<8x1xi1> to vector<8x64xi1>
    %481 = vector.broadcast %cst_245 : f32 to vector<8x64xf32>
    %482 = arith.select %480, %476, %481 : vector<8x64xi1>, vector<8x64xf32>
    %483 = vector.extract_strided_slice %482 {offsets = [0, 0], sizes = [8, 32], strides = [1, 1]} : vector<8x64xf32> to vector<8x32xf32>
    %484 = vector.extract_strided_slice %482 {offsets = [0, 32], sizes = [8, 32], strides = [1, 1]} : vector<8x64xf32> to vector<8x32xf32>
    %485 = vector.broadcast %5 : vector<8x1xf32> to vector<8x32xf32>
    %486 = arith.mulf %485, %483 : vector<8x32xf32>
    %487 = arith.subf %483, %486 : vector<8x32xf32>
    %488 = tpu.concatenate %487, %486 in 1 : vector<8x32xf32>, vector<8x32xf32> -> vector<8x64xf32>
    %489 = arith.truncf %488 : vector<8x64xf32> to vector<8x64xbf16>
    %cst_246 = arith.constant dense<0.000000e+00> : vector<8x128xf32>
    %490 = tpu.matmul %489, %299, %cst_246 {dimension_numbers = #tpu.dot_dimension_numbers<[1], [0], [0], [1], [0, 0, 1, 1], [], []>} : vector<8x64xbf16>, vector<64x128xbf16>, vector<8x128xf32> -> vector<8x128xf32>
    %c0_247 = arith.constant 0 : index
    %c0_248 = arith.constant 0 : index
    %491 = vector.load %arg19[%c0_247, %c0_248] : memref<8x32xf32, #tpu.memory_space<vmem>>, vector<8x32xf32>
    %492 = vector.extract_strided_slice %490 {offsets = [0, 96], sizes = [8, 32], strides = [1, 1]} : vector<8x128xf32> to vector<8x32xf32>
    %493 = arith.addf %491, %492 : vector<8x32xf32>
    %cst_249 = arith.constant 0.000000e+00 : f32
    %494 = vector.broadcast %cst_249 : f32 to vector<8x32xf32>
    %495 = arith.subf %494, %493 : vector<8x32xf32>
    %496 = math.exp %495 : vector<8x32xf32>
    %cst_250 = arith.constant 1.000000e+00 : f32
    %497 = vector.broadcast %cst_250 : f32 to vector<8x32xf32>
    %498 = arith.addf %497, %496 : vector<8x32xf32>
    %499 = tpu.reciprocal %498 {approx = true} : vector<8x32xf32> -> vector<8x32xf32>
    %cst_251 = arith.constant -1.000000e+14 : f32
    %cst_252 = arith.constant 1.000000e+14 : f32
    %500 = vector.broadcast %cst_251 : f32 to vector<8x32xf32>
    %501 = arith.maximumf %500, %484 : vector<8x32xf32>
    %502 = vector.broadcast %cst_252 : f32 to vector<8x32xf32>
    %503 = arith.minimumf %502, %501 : vector<8x32xf32>
    %504 = arith.mulf %499, %503 : vector<8x32xf32>
    %505 = vector.extract_strided_slice %490 {offsets = [0, 0], sizes = [8, 96], strides = [1, 1]} : vector<8x128xf32> to vector<8x96xf32>
    %506 = tpu.concatenate %505, %504 in 1 : vector<8x96xf32>, vector<8x32xf32> -> vector<8x128xf32>
    %507 = arith.truncf %506 : vector<8x128xf32> to vector<8x128xbf16>
    %cst_253 = arith.constant dense<0.000000e+00> : vector<8x128xf32>
    %508 = tpu.matmul %3, %507, %cst_253 {dimension_numbers = #tpu.dot_dimension_numbers<[1], [0], [0], [1], [0, 0, 1, 1], [], []>} : vector<8x8xbf16>, vector<8x128xbf16>, vector<8x128xf32> -> vector<8x128xf32>
    %c0_254 = arith.constant 0 : index
    %c0_255 = arith.constant 0 : index
    %509 = vector.load %arg17[%c0_254, %c0_255] : memref<8x96xf32, #tpu.memory_space<vmem>>, vector<8x96xf32>
    %510 = vector.extract_strided_slice %508 {offsets = [0, 0], sizes = [8, 96], strides = [1, 1]} : vector<8x128xf32> to vector<8x96xf32>
    %511 = arith.addf %509, %510 : vector<8x96xf32>
    %512 = vector.extract_strided_slice %508 {offsets = [0, 96], sizes = [8, 32], strides = [1, 1]} : vector<8x128xf32> to vector<8x32xf32>
    %513 = arith.addf %474, %512 : vector<8x32xf32>
    %c0_256 = arith.constant 0 : index
    %c0_257 = arith.constant 0 : index
    %514 = vector.load %arg18[%c0_256, %c0_257] : memref<8x96xf32, #tpu.memory_space<vmem>>, vector<8x96xf32>
    %515 = arith.addf %514, %511 : vector<8x96xf32>
    %516 = vector.broadcast %301 : vector<1x96xf32> to vector<8x96xf32>
    %517 = arith.addf %515, %516 : vector<8x96xf32>
    %518 = vector.extract_strided_slice %517 {offsets = [0, 0], sizes = [8, 32], strides = [1, 1]} : vector<8x96xf32> to vector<8x32xf32>
    %cst_258 = arith.constant 0.000000e+00 : f32
    %519 = vector.broadcast %cst_258 : f32 to vector<8x32xf32>
    %520 = arith.subf %519, %518 : vector<8x32xf32>
    %521 = math.exp %520 : vector<8x32xf32>
    %cst_259 = arith.constant 1.000000e+00 : f32
    %522 = vector.broadcast %cst_259 : f32 to vector<8x32xf32>
    %523 = arith.addf %522, %521 : vector<8x32xf32>
    %524 = tpu.reciprocal %523 {approx = true} : vector<8x32xf32> -> vector<8x32xf32>
    %525 = vector.extract_strided_slice %517 {offsets = [0, 32], sizes = [8, 32], strides = [1, 1]} : vector<8x96xf32> to vector<8x32xf32>
    %cst_260 = arith.constant 0.000000e+00 : f32
    %526 = vector.broadcast %cst_260 : f32 to vector<8x32xf32>
    %527 = arith.subf %526, %525 : vector<8x32xf32>
    %528 = math.exp %527 : vector<8x32xf32>
    %cst_261 = arith.constant 1.000000e+00 : f32
    %529 = vector.broadcast %cst_261 : f32 to vector<8x32xf32>
    %530 = arith.addf %529, %528 : vector<8x32xf32>
    %531 = tpu.reciprocal %530 {approx = true} : vector<8x32xf32> -> vector<8x32xf32>
    %532 = vector.extract_strided_slice %517 {offsets = [0, 64], sizes = [8, 32], strides = [1, 1]} : vector<8x96xf32> to vector<8x32xf32>
    %533 = math.tanh %532 : vector<8x32xf32>
    %534 = arith.mulf %524, %533 : vector<8x32xf32>
    %535 = arith.addf %534, %513 : vector<8x32xf32>
    %cst_262 = arith.constant 0.000000e+00 : f32
    %536 = vector.broadcast %cst_262 : f32 to vector<8x1xf32>
    %537 = arith.cmpf ogt, %469, %536 : vector<8x1xf32>
    %538 = vector.shape_cast %537 : vector<8x1xi1> to vector<8x1xi1>
    %539 = vector.broadcast %538 : vector<8x1xi1> to vector<8x32xi1>
    %540 = arith.select %539, %535, %513 : vector<8x32xi1>, vector<8x32xf32>
    %cst_263 = arith.constant 0.000000e+00 : f32
    %541 = vector.broadcast %cst_263 : f32 to vector<8x1xf32>
    %542 = arith.cmpf ogt, %469, %541 : vector<8x1xf32>
    %543 = math.tanh %535 : vector<8x32xf32>
    %544 = arith.mulf %531, %543 : vector<8x32xf32>
    %545 = vector.shape_cast %542 : vector<8x1xi1> to vector<8x1xi1>
    %546 = vector.broadcast %545 : vector<8x1xi1> to vector<8x32xi1>
    %547 = arith.select %546, %544, %473 : vector<8x32xi1>, vector<8x32xf32>
    %548 = tpu.concatenate %547, %540 in 1 : vector<8x32xf32>, vector<8x32xf32> -> vector<8x64xf32>
    %c0_264 = arith.constant 0 : index
    %c0_265 = arith.constant 0 : index
    %549 = vector.load %arg16[%c0_264, %c0_265] : memref<8x64xf32, #tpu.memory_space<vmem>>, vector<8x64xf32>
    tpu.vector_store %arg16[%c0_264, %c0_265], %548 {strides = array<i32>} : memref<8x64xf32, #tpu.memory_space<vmem>>, vector<8x64xf32>,
    %c0_266 = arith.constant 0 : index
    %c0_267 = arith.constant 0 : index
    %550 = vector.load %arg17[%c0_266, %c0_267] : memref<8x96xf32, #tpu.memory_space<vmem>>, vector<8x96xf32>
    tpu.vector_store %arg17[%c0_266, %c0_267], %511 {strides = array<i32>} : memref<8x96xf32, #tpu.memory_space<vmem>>, vector<8x96xf32>,
    %c0_268 = arith.constant 0 : index
    %c0_269 = arith.constant 0 : index
    %551 = vector.load %arg16[%c0_268, %c0_269] : memref<8x64xf32, #tpu.memory_space<vmem>>, vector<8x32xf32>
    %c0_270 = arith.constant 0 : index
    %c0_271 = arith.constant 0 : index
    %c0_272 = arith.constant 0 : index
    %552 = vector.load %arg15[%c0_270, %c0_271, %c0_272] : memref<1x8x32xf32, #tpu.memory_space<vmem>>, vector<1x8x32xf32>
    %553 = vector.shape_cast %552 : vector<1x8x32xf32> to vector<8x32xf32>
    %554 = vector.shape_cast %551 : vector<8x32xf32> to vector<1x8x32xf32>
    tpu.vector_store %arg15[%c0_270, %c0_271, %c0_272], %554 {strides = array<i32>} : memref<1x8x32xf32, #tpu.memory_space<vmem>>, vector<1x8x32xf32>,
    return
  }
  func.func @transform_0(%arg0: i32) -> (i32, i32, i32) {
    %c0_i32 = arith.constant 0 : i32
    %c0_i32_0 = arith.constant 0 : i32
    %c0_i32_1 = arith.constant 0 : i32
    return %arg0, %c0_i32, %c0_i32_0 : i32, i32, i32
  }
  func.func @transform_1(%arg0: i32) -> (i32, i32, i32) {
    %c0_i32 = arith.constant 0 : i32
    %c0_i32_0 = arith.constant 0 : i32
    %c0_i32_1 = arith.constant 0 : i32
    return %arg0, %c0_i32, %c0_i32_0 : i32, i32, i32
  }
  func.func @transform_2(%arg0: i32) -> (i32, i32, i32, i32) {
    %c0_i32 = arith.constant 0 : i32
    %c0_i32_0 = arith.constant 0 : i32
    %c0_i32_1 = arith.constant 0 : i32
    %c0_i32_2 = arith.constant 0 : i32
    return %arg0, %c0_i32, %c0_i32_0, %c0_i32_1 : i32, i32, i32, i32
  }
  func.func @transform_3(%arg0: i32) -> (i32, i32, i32, i32) {
    %c0_i32 = arith.constant 0 : i32
    %c0_i32_0 = arith.constant 0 : i32
    %c0_i32_1 = arith.constant 0 : i32
    %c0_i32_2 = arith.constant 0 : i32
    return %arg0, %c0_i32, %c0_i32_0, %c0_i32_1 : i32, i32, i32, i32
  }
  func.func @transform_4(%arg0: i32) -> (i32, i32, i32) {
    %c0_i32 = arith.constant 0 : i32
    %c0_i32_0 = arith.constant 0 : i32
    %c0_i32_1 = arith.constant 0 : i32
    return %arg0, %c0_i32, %c0_i32_0 : i32, i32, i32
  }
  func.func @transform_5(%arg0: i32) -> (i32, i32, i32) {
    %c0_i32 = arith.constant 0 : i32
    %c0_i32_0 = arith.constant 0 : i32
    %c0_i32_1 = arith.constant 0 : i32
    return %arg0, %c0_i32, %c0_i32_0 : i32, i32, i32
  }
  func.func @transform_6(%arg0: i32) -> (i32, i32, i32) {
    %c0_i32 = arith.constant 0 : i32
    %c0_i32_0 = arith.constant 0 : i32
    %c0_i32_1 = arith.constant 0 : i32
    return %arg0, %c0_i32, %c0_i32_0 : i32, i32, i32
  }
  func.func @transform_7(%arg0: i32) -> (i32, i32, i32) {
    %c0_i32 = arith.constant 0 : i32
    %c0_i32_0 = arith.constant 0 : i32
    %c0_i32_1 = arith.constant 0 : i32
    return %arg0, %c0_i32, %c0_i32_0 : i32, i32, i32
  }
  func.func @transform_8(%arg0: i32) -> (i32, i32, i32) {
    %c0_i32 = arith.constant 0 : i32
    %c0_i32_0 = arith.constant 0 : i32
    %c0_i32_1 = arith.constant 0 : i32
    return %arg0, %c0_i32, %c0_i32_0 : i32, i32, i32
  }
  func.func @transform_9(%arg0: i32) -> (i32, i32, i32) {
    %c0_i32 = arith.constant 0 : i32
    %c0_i32_0 = arith.constant 0 : i32
    %c0_i32_1 = arith.constant 0 : i32
    return %arg0, %c0_i32, %c0_i32_0 : i32, i32, i32
  }
  func.func @transform_10(%arg0: i32) -> (i32, i32, i32) {
    %c0_i32 = arith.constant 0 : i32
    %c0_i32_0 = arith.constant 0 : i32
    %c0_i32_1 = arith.constant 0 : i32
    return %arg0, %c0_i32, %c0_i32_0 : i32, i32, i32
  }
  func.func @transform_11(%arg0: i32) -> (i32, i32, i32) {
    %c0_i32 = arith.constant 0 : i32
    %c0_i32_0 = arith.constant 0 : i32
    %c0_i32_1 = arith.constant 0 : i32
    return %arg0, %c0_i32, %c0_i32_0 : i32, i32, i32
  }
  func.func @transform_12(%arg0: i32) -> (i32, i32, i32) {
    %c0_i32 = arith.constant 0 : i32
    %c0_i32_0 = arith.constant 0 : i32
    %c0_i32_1 = arith.constant 0 : i32
    return %arg0, %c0_i32, %c0_i32_0 : i32, i32, i32
  }
  func.func @transform_13(%arg0: i32) -> (i32, i32, i32) {
    %c0_i32 = arith.constant 0 : i32
    %c0_i32_0 = arith.constant 0 : i32
    %c0_i32_1 = arith.constant 0 : i32
    return %arg0, %c0_i32, %c0_i32_0 : i32, i32, i32
  }
  func.func @transform_14(%arg0: i32) -> (i32, i32, i32) {
    %c0_i32 = arith.constant 0 : i32
    %c0_i32_0 = arith.constant 0 : i32
    %c0_i32_1 = arith.constant 0 : i32
    return %arg0, %c0_i32, %c0_i32_0 : i32, i32, i32
  }
}

</mosaic_0001>

<bundles_post_ra>
// kernel: tpu_custom_call.1
= control target key start
LH: loop header
LB: loop body
LE: loop exit
PB: predicated region body
PF: predicated region fallthrough
CT: control target
= control target key end

     0   :  { %s3238_s0 = inlined_call_operand.vmem [shape: f32[2,8,16], index: 0, kind: input, shape index: {}]   ;;  %s3239_s1 = inlined_call_operand.vmem [shape: f32[2,8,1], index: 1, kind: input, shape index: {}]   ;;  %s3240_s2 = inlined_call_operand.vmem [shape: f32[2,3,8,1], index: 2, kind: input, shape index: {}]   ;;  %s3241_s3 = inlined_call_operand.vmem [shape: f32[2,3,8,1], index: 3, kind: input, shape index: {}]   ;;  %s3242_s4 = inlined_call_operand.hbm [shape: bf16[2,8,8], index: 4, kind: input, shape index: {}]   ;;  %s3243_s5 = inlined_call_operand.hbm [shape: bf16[2,8,8], index: 5, kind: input, shape index: {}]   ;;  %s3244_s6 = inlined_call_operand.hbm [shape: bf16[2,16,128], index: 6, kind: input, shape index: {}]   ;;  %s3245_s7 = inlined_call_operand.vmem [shape: bf16[2,64,128], index: 7, kind: input, shape index: {}]   ;;  %s3246_s8 = inlined_call_operand.vmem [shape: f32[2,1,96], index: 8, kind: input, shape index: {}]   ;;  %s3247_s9 = inlined_call_operand.vmem [shape: f32[2,1,32], index: 9, kind: input, shape index: {}]   ;;  %s3248_s10 = inlined_call_operand.vmem [shape: bf16[2,32,128], index: 10, kind: input, shape index: {}]   ;;  %s3249_s11 = inlined_call_operand.hbm [shape: bf16[2,64,128], index: 11, kind: input, shape index: {}]   ;;  %s3250_s12 = inlined_call_operand.vmem [shape: f32[2,1,96], index: 12, kind: input, shape index: {}]   ;;  %s3251_s13 = inlined_call_operand.vmem [shape: f32[2,1,32], index: 13, kind: input, shape index: {}]   ;;  %s3252_s14 = inlined_call_operand.hbm [shape: f32[2,8,32], index: 14, kind: output, shape index: {}]  }
   0x1   :  { %3262 = sst [smem:[#allocation25_spill]] %s3240_s2 }
   0x2   :  { %3263 = sst [smem:[#allocation26_spill]] %s3243_s5 }
   0x3   :  { %3264 = sst [smem:[#allocation27_spill]] %s3246_s8 }
   0x4   :  { %3265 = sst [smem:[#allocation28_spill]] %s3247_s9 }
   0x5   :  { %3266 = sst [smem:[#allocation29_spill]] %s3248_s10 }
   0x6   :  { %3267 = sst [smem:[#allocation30_spill]] %s3250_s12 }
   0x7   :  { %3268 = sst [smem:[#allocation31_spill]] %s3251_s13 }
   0x8   :  { %3269 = sst [smem:[#allocation32_spill]] %s3252_s14 }
   0x9   :  { %19 = vsyncpa [#allocation7], 0 }
   0xa   :  { %21 = vsyncpa [#allocation7 + $0x1], 0 }
   0xb   :  { %22 = vsyncpa [#allocation10], 0 }
   0xc   :  { %24 = vsyncpa [#allocation10 + $0x1], 0 }
   0xd   :  { %25 = vsyncpa [#allocation13], 0 }
   0xe   :  { %27 = vsyncpa [#allocation13 + $0x1], 0 }
   0xf   :  { %28 = vsyncpa [#allocation8], 0 }
  0x10   :  { %30 = vsyncpa [#allocation8 + $0x1], 0  ;;  %s2679_s29 = smov 0   ;;  %s2681_s30 = smov 0  }
  0x11   :  { %s2683_s15 = smov 0   ;;  %s2685_s16 = smov 0  }
  0x12 LB: > { %3270 = sst [smem:[#allocation19_spill]] %s2583_s29  ;;  %s2700_s17 = sadd.s32 4294967295, %s2595_s16   ;;  %s2595_s16 = sphi %s2685_s16, %s3293_s16   ;;  %s2591_s15 = sphi %s2683_s15, %s3298_s15   ;;  %s2587_s30 = sphi %s2681_s30, %s3297_s30   ;;  %s2583_s29 = sphi %s2679_s29, %s3296_s29  }
  0x13   : > { %3271 = sst [smem:[#allocation20_spill]] %s2591_s15  ;;  %s2126_s18 = sadd.s32 4294967294, %s2595_s16  }
  0x14   : > { %s2704_s19 = sadd.s32 1, %s2595_s16   ;;  %s147_s20 = sadd.s32 1, %s2591_s15 }
  0x15   : > { %3272 = sst [smem:[#allocation21_spill]] %s2704_s19  ;;  %s144_s21 = ssub.s32 %s2595_s16, %s2704_s19 }
  0x16   : > { %p154_p0 = scmp.ne.s32.totalorder %s2591_s15, %s2587_s30  ;;  %p145_p1 = scmp.eq.s32.totalorder %s144_s21, 0 }
  0x17   : > { %p155_p2 = scmp.eq.s32.totalorder %s2595_s16, 0  ;;  %p160_p3 = scmp.ne.s32.totalorder %s2587_s30, %s2583_s29 }
  0x18   : > { %p161_p4 = scmp.eq.s32.totalorder %s2700_s17, 0  ;;  %p418_p7 = scmp.eq.s32.totalorder %s2700_s17, 1 }
  0x19   : > { %s2716_s22 = scalar_select %p145_p1, %s2591_s15, %s147_s20  }
  0x1a   : > { %p156_p5 = por %p155_p2, %p154_p0  ;;  %p2718_p6 = por %p161_p4, %p160_p3 }
  0x1b   : > { %3273 = sst [smem:[#allocation22_spill]] %s2716_s22  ;;  %p424_p8 = scmp.eq.s32.totalorder %s2126_s18, 1 }
  0x1c   : > { %p2128_p9 = scmp.ge.s32.totalorder %s2595_s16, 2  ;;  %p2280_p10 = scmp.lt.s32.totalorder %s2595_s16, 2 }
  0x1d   : > { %p2725_p11 = por %p418_p7, %p154_p0  ;;  %p2729_p12 = por %p424_p8, %p160_p3 }
  0x1e   : > { %s2734_s26 = sand.u32 1, %s2591_s15   ;;  %s2130_s27 = sshll.u32 %s2595_s16, 2 }
  0x1f   : > { %s3275_s24 = scalar_select %p2725_p11, 1, 0 }
  0x20   : > { %s3277_s25 = scalar_select %p2729_p12, 1, 0 }
  0x21   : > { %3276 = sst [smem:[#allocation23_spill]] %s3275_s24  ;;  %s3261_s28 = sshll.u32 %s2734_s26, 2 }
  0x22   : > { %3278 = sst [smem:[#allocation24_spill]] %s3277_s25  ;;  %p2738_p13 = pnand %p2280_p10, %p156_p5 }
  0x23   : > { %s493_s18 = sand.u32 1, %s2595_s16   ;;  %s3280_s5 = sld [smem:[#allocation26_spill]] }
  0x24   : > { %s497_s29 = scalar_lea.vmem [#allocation9], %s3261_s28  ;;  %p2139_p0 = scmp.ge.s32.totalorder %s2595_s16, 1 }
  0x25   : > { %s505_s25 = sshll.u32 %s497_s29, 4  ;;  %s2749_s14 = scalar_lea.sflag [#allocation10], %s493_s18  ;;  %s506_s25 = int_to_ptr.vmem [resolvable:$true] %s505_s25 }
  0x26   : > { %p2405_p2 = pneg %p2738_p13 }
  0x29   : > { %s501_s19 = scalar_lea.hbm %s3280_s5, %s2130_s27  ;;  %s2408_s29 = scalar_lea.hbm %s3280_s5, 8 }
  0x2a   : > { %s503_s15 = sshll.u32 %s501_s19, 4  ;;  %s504_s15 = int_to_ptr.hbm [resolvable:$true] %s503_s15 }
  0x2b   : > { %s2401_s24 = sshra.s32 %s504_s15, 4  ;;  %s2402_s24 = int_to_ptr.hbm [resolvable:$true] %s2401_s24 }
  0x2c   : > { %s2403_s12 = scalar_lea.hbm %s2402_s24, 4  ;;  %p2409_p5 = scmp.lt.s32.totalorder %s2402_s24, %s3280_s5 }
  0x2d   : > { %p2404_p1 = scmp.ne.s32.totalorder %s2402_s24, %s2403_s12  ;;  %p2410_p7 = scmp.lt.s32.totalorder %s2408_s29, %s2403_s12 }
  0x2f   : > { %p2406_p3 = pnand %p2405_p2, %p2404_p1  ;;  %p2411_p8 = por %p2410_p7, %p2409_p5 }
  0x31   : > { %p2407_p4 = pneg %p2406_p3 }
  0x33   : > { %p2412_p10 = pnand %p2411_p8, %p2407_p4 }
  0x35   : > { %2415 = shalt.err (!%p2412_p10)
}
  0x36   : > { %2269 = dma.hbm_to_vmem [thread:$0]  (!%p2738_p13), %s504_s15, 64, %s506_s25, %s2749_s14  }
  0x37   : > { %p594_p1 = scmp.lt.s32.totalorder %s2595_s16, 3  ;;  %s482_s28 = scalar_lea.hbm %s3242_s4, %s2130_s27 }
  0x38   : > { %s484_s24 = sshll.u32 %s482_s28, 4  ;;  %s3282_s21 = sshll.u32 %s2734_s26, 2  ;;  %s485_s24 = int_to_ptr.hbm [resolvable:$true] %s484_s24 }
  0x39   : > { %p2771_p3 = pnand %p2139_p0, %p594_p1  ;;  %s478_s29 = scalar_lea.vmem [#allocation6], %s3282_s21 }
  0x3a   : > { %s486_s19 = sshll.u32 %s478_s29, 4  ;;  %s2133_s5 = sshll.u32 %s2734_s26, 3  ;;  %s487_s19 = int_to_ptr.vmem [resolvable:$true] %s486_s19 }
  0x3b   : > { %s475_s13 = scalar_lea.sflag [#allocation7], %s2734_s26  ;;  %s2431_s10 = sshra.s32 %s485_s24, 4  ;;  %s2432_s10 = int_to_ptr.hbm [resolvable:$true] %s2431_s10 }
  0x3c   : > { %s2433_s15 = scalar_lea.hbm %s2432_s10, 4  ;;  %s2438_s18 = scalar_lea.hbm %s3242_s4, 8 }
  0x3d   : > { %p2434_p4 = scmp.ne.s32.totalorder %s2432_s10, %s2433_s15  ;;  %p2439_p0 = scmp.lt.s32.totalorder %s2432_s10, %s3242_s4 }
  0x3e   : > { %p2440_p8 = scmp.lt.s32.totalorder %s2438_s18, %s2433_s15 }
  0x3f   : > { %p2436_p5 = pnand %p2434_p4, %p2405_p2 }
  0x40   : > { %p2441_p10 = por %p2440_p8, %p2439_p0 }
  0x41   : > { %p2437_p7 = pneg %p2436_p5 }
  0x43   : > { %p2442_p1 = pnand %p2441_p10, %p2437_p7 }
  0x45   : > { %2445 = shalt.err (!%p2442_p1)
}
  0x46   : > { %2266 = dma.hbm_to_vmem [thread:$0]  (!%p2738_p13), %s485_s24, 64, %s487_s19, %s475_s13  }
  0x47   : > { %s2237_s21 = sshll.u32 %s2595_s16, 3  ;;  %s516_s25 = scalar_lea.vmem [#allocation11], %s2133_s5 }
  0x48   : > { %s521_s8 = scalar_lea.hbm %s3244_s6, %s2237_s21  ;;  %s524_s27 = sshll.u32 %s516_s25, 4  ;;  %s525_s27 = int_to_ptr.vmem [resolvable:$true] %s524_s27 }
  0x49   : > { %s522_s9 = sshll.u32 %s521_s8, 4  ;;  %s2468_s24 = scalar_lea.hbm %s3244_s6, 16  ;;  %s523_s9 = int_to_ptr.hbm [resolvable:$true] %s522_s9 }
  0x4a   : > { %s2461_s10 = sshra.s32 %s523_s9, 4  ;;  %s2462_s10 = int_to_ptr.hbm [resolvable:$true] %s2461_s10 }
  0x4b   : > { %s2463_s15 = scalar_lea.hbm %s2462_s10, 8  ;;  %p2469_p0 = scmp.lt.s32.totalorder %s2462_s10, %s3244_s6 }
  0x4c   : > { %p2464_p4 = scmp.ne.s32.totalorder %s2462_s10, %s2463_s15  ;;  %p2470_p8 = scmp.lt.s32.totalorder %s2468_s24, %s2463_s15 }
  0x4e   : > { %p2466_p5 = pnand %p2464_p4, %p2405_p2  ;;  %p2471_p10 = por %p2470_p8, %p2469_p0 }
  0x50   : > { %p2467_p7 = pneg %p2466_p5 }
  0x52   : > { %p2472_p1 = pnand %p2471_p10, %p2467_p7 }
  0x54   : > { %2475 = shalt.err (!%p2472_p1)
}
  0x55   : > { %s2597_s5 = smov 64   ;;  %s2598_s8 = smov 4  }
  0x56   : > { %2272 = dma.hbm_to_vmem [thread:$0]  (!%p2738_p13), %s523_s9, 128, %s525_s27, %s2749_s14, %s2597_s5, %s2597_s5, %s2598_s8  }
  0x57   : > { %s2136_s22 = sshll.u32 %s2734_s26, 5  ;;  %s2238_s28 = sshll.u32 %s2595_s16, 5 }
  0x58   : > { %s571_s25 = scalar_lea.hbm %s3249_s11, %s2238_s28  ;;  %s566_s15 = scalar_lea.vmem [#allocation12], %s2136_s22 }
  0x59   : > { %s572_s10 = sshll.u32 %s571_s25, 4  ;;  %s574_s18 = sshll.u32 %s566_s15, 4  ;;  %s573_s10 = int_to_ptr.hbm [resolvable:$true] %s572_s10  ;;  %s575_s18 = int_to_ptr.vmem [resolvable:$true] %s574_s18 }
  0x5a   : > { %s563_s13 = scalar_lea.sflag [#allocation13], %s2734_s26  ;;  %s2491_s24 = sshra.s32 %s573_s10, 4  ;;  %s2492_s24 = int_to_ptr.hbm [resolvable:$true] %s2491_s24 }
  0x5b   : > { %s2493_s19 = scalar_lea.hbm %s2492_s24, 32  ;;  %s2498_s27 = scalar_lea.hbm %s3249_s11, 64 }
  0x5c   : > { %p2494_p4 = scmp.ne.s32.totalorder %s2492_s24, %s2493_s19  ;;  %p2499_p0 = scmp.lt.s32.totalorder %s2492_s24, %s3249_s11 }
  0x5d   : > { %p2500_p8 = scmp.lt.s32.totalorder %s2498_s27, %s2493_s19 }
  0x5e   : > { %p2496_p5 = pnand %p2494_p4, %p2405_p2 }
  0x5f   : > { %p2501_p10 = por %p2500_p8, %p2499_p0 }
  0x60   : > { %p2497_p7 = pneg %p2496_p5 }
  0x62   : > { %p2502_p1 = pnand %p2501_p10, %p2497_p7 }
  0x64   : > { %2505 = shalt.err (!%p2502_p1)
}
  0x65   : > { %2275 = dma.hbm_to_vmem [thread:$0]  (!%p2738_p13), %s573_s10, 512, %s575_s18, %s563_s13, %s2597_s5, %s2597_s5, %s2598_s8  }
  0x66   : > { %598 = sbr.rel (%p2771_p3) target bundleno = 7323 (0x1c9b), region = 76  ;;  %s2826_s26 = sand.u32 (!%p2771_p3), 1, %s2587_s30  }
  0x67   : > { %s2140_s22 = sshll.u32 (!%p2771_p3), %s2826_s26, 2  ;;  %s601_s21 = scalar_lea.sflag (!%p2771_p3), [#allocation7], %s2826_s26 }
  0x68   : > { %s2830_s29 = scalar_lea.vmem (!%p2771_p3), [#allocation6], %s2140_s22 }
  0x6b   : > { %2566 = dma.done.wait (%p2718_p6), %s601_s21, 64  }
  0x6c   : > { %2568 = vsyncadd (%p2718_p6), %s601_s21, 4294967232  ;;  %s610_s20 = sand.u32 1, %s2700_s17   ;;  %s2837_s5 = scalar_lea.vmem [#allocation9], %s2140_s22 }
  0x6d   : > { %s611_s12 = scalar_lea.sflag [#allocation10], %s610_s20 }
  0x6e   : > { %2570 = dma.done.wait (%p2718_p6), %s611_s12, 192  }
  0x6f   : > { %2572 = vsyncadd (%p2718_p6), %s611_s12, 4294967104  ;;  %s2142_s8 = sshll.u32 %s2826_s26, 3  ;;  %s2143_s25 = sshll.u32 %s2826_s26, 5 }
  0x70   : > { %s624_s10 = scalar_lea.vmem [#allocation11], %s2142_s8  ;;  %s631_s15 = scalar_lea.sflag [#allocation13], %s2826_s26 }
  0x71   : > { %s2848_s18 = scalar_lea.vmem [#allocation12], %s2143_s25 }
  0x72   : > { %2574 = dma.done.wait (%p2718_p6), %s631_s15, 512  }
  0x73   : > { %2576 = vsyncadd (%p2718_p6), %s631_s15, 4294966784  ;;  %vm839_vm0 = vcmask 523264   ;;  %p735_p13 = scmp.lt.s32.totalorder %s2700_s17, 1  ;;  %v2599_v0 = vmov 0.0   ;;  %v2600_v1 = vmov 0   ;;  %vm820_vm1 = vcmask 1043456  }
  0x74   : > { %840 = vst.msk [vmem:[#allocation2] sm:$0xff] %vm839_vm0, %v2599_v0  ;;  %2321 = vset.pattern.permute.xlu0 %v2600_v1  ;;  %2322 = vset.pattern.permute.xlu2 %v2600_v1  ;;  %v2241_v4 = vld [vmem:[%s624_s10] sm:$0xff]  ;;  %vm790_vm3 = vcmask 130048   ;;  %v2886_v10 = vld [vmem:[%s2830_s29] sm:$0xf]  ;;  %vm816_vm4 = vcmask 64512  }
  0x75   : > { %s2859_s13 = scalar_select %p735_p13, %s2700_s17, 1  ;;  %2323 = vset.pattern.permute.xlu1 %v2600_v1  ;;  %801 = vmatpush.bf16.msra.mxu0 %v2241_v4  ;;  %vm807_vm5 = vcmask 785408   ;;  %vm837_vm7 = vcmask 261120   ;;  %v2944_v52 = vld [vmem:[%s2837_s5] sm:$0xf] }
  0x76   : > { %841 = vst.msk [vmem:[#allocation3] sm:$0xff] %vm807_vm5, %v2599_v0  ;;  %s2602_s2 = smov 96   ;;  %s2603_s25 = smov 64  }
  0x77   : > { %s2252_s23 = smul.u32 24, %s2859_s13  ;;  %s2145_s24 = sshll.u32 %s2859_s13, 3 }
  0x78   : > { %s738_s14 = scalar_lea.vmem %s3238_s0, %s2145_s24  ;;  %s742_s20 = scalar_lea.vmem %s3239_s1, %s2145_s24 }
  0x79   : > { %s2873_s28 = scalar_lea.vmem %s3241_s3, %s2252_s23  ;;  %v779_v5 = vld [vmem:[%s738_s14] sm:$0xff]  ;;  %s2239_s12 = sshll.u32 %s2859_s13, 5 }
  0x7a   : > { %v852_v2 = vld [vmem:[%s2873_s28] sm:$0xff]  ;;  %v783_v8 = vpack.c.bf16 %v779_v5, %v779_v5  ;;  %s757_s15 = scalar_lea.vmem %s3245_s7, %s2239_s12  ;;  %s2601_s24 = smov 32   ;;  %v2180_v5 = vld [vmem:[%s2873_s28 + $0x8] sm:$0xff] }
  0x7b   : > { %v2876_v3 = vld [vmem:[#allocation2] sm:$0xff]  ;;  %vm871_vm2 = vcmp.gt.f32.partialorder %v852_v2, 0.0  ;;  %v2899_v12 = vld [vmem:[%s757_s15 + $0x18] sm:$0xff]  ;;  %v2902_v13 = vld [vmem:[%s757_s15 + $0x10] sm:$0xff]  ;;  %s3283_s14 = sld [smem:[#allocation28_spill]]  ;;  %vm1054_vm9 = vcmp.gt.f32.partialorder %v2180_v5, 0.0 }
  0x7c   : > { %v854_v6 = vpack.c.bf16 %v2876_v3, %v2876_v3  ;;  %v2881_v7 = vsel %vm871_vm2, 1, %v2600_v1  ;;  %2157 = vmatmul.msk.bf16.vlgmr.msra.gmra.mxu0 %vm790_vm3, %v783_v8  ;;  %v778_v11 = vld [vmem:[%s742_s20] sm:$0xff]  ;;  %922 = vmatpush.bf16.msra.mxu3 %v2899_v12  ;;  %v2906_v14 = vld [vmem:[%s757_s15 + $0x8] sm:$0xff]  ;;  %s3284_s20 = sld [smem:[#allocation27_spill]] }
  0x7d   : > { %874 = vperm.xlu0 %2321, %v2881_v7   ;;  %v2917_v25 = vld [vmem:[%s757_s15] sm:$0xff]  ;;  %v974_v53 = vld [vmem:[#allocation3] sm:$0xff]  ;;  %s3285_s15 = sld [smem:[#allocation25_spill]] }
  0x7e   : > { %v856_v9 = vsel %vm820_vm1, %v854_v6, 0  ;;  %v2975_v6 = vsel %vm1054_vm9, 1, %v2600_v1  ;;  %s3287_s21 = sld [smem:[#allocation31_spill]] }
  0x7f   : > { %865 = vmatpush.bf16.msra.mxu2 %v856_v9  ;;  %s3288_s10 = sld [smem:[#allocation30_spill]] }
  0x80   : > { %923 = vmatpush.bf16.msra.mxu3 %v2902_v13 }
  0x81   : > { %s763_s27 = scalar_lea.vmem %s3283_s14, %s2859_s13  ;;  %s3286_s14 = sld [smem:[#allocation29_spill]] }
  0x82   : > { %2159 = vmatmul.msk.bf16.vlgmr.msra.gmra.mxu2 %vm816_vm4, %v2886_v10  ;;  %v2324_v32 = vld [vmem:[%s763_s27] ss:$0 sm:$0xff]  ;;  %s760_s12 = scalar_lea.vmem %s3284_s20, %s2859_s13 }
  0x83   : > { %1076 = vmatpush.bf16.msrb.mxu2 %v2899_v12  ;;  %v2948_v56 = vld [vmem:[%s760_s12] ss:$0 sm:$0xff]  ;;  %s2962_s19 = scalar_lea.vmem %s3285_s15, %s2252_s23  ;;  %s2240_s23 = sshll.u32 %s2859_s13, 4 }
  0x84   : > { %924 = vmatpush.bf16.msra.mxu3 %v2906_v14  ;;  %v851_v62 = vld [vmem:[%s2962_s19] sm:$0xff]  ;;  %s774_s20 = scalar_lea.vmem %s3287_s21, %s2859_s13 }
  0x85   : > { %880 = vperm.xlu0 %2321, %v778_v11   ;;  %vm1003_vm8 = vcmp.gt.f32.partialorder %v851_v62, 0.0  ;;  %s771_s15 = scalar_lea.vmem %s3288_s10, %s2859_s13 }
  0x86   : > { %v2966_v63 = vsel %vm1003_vm8, 1, %v2600_v1 }
  0x87   : > { %1077 = vmatpush.bf16.msrb.mxu2 %v2902_v13  ;;  %s768_s27 = scalar_lea.vmem %s3286_s14, %s2240_s23  ;;  %s3290_s23 = sld [smem:[#allocation32_spill]] }
  0x88   : > { %925 = vmatpush.bf16.msra.mxu3 %v2917_v25 }
  0x8b   : > { %1078 = vmatpush.bf16.msrb.mxu2 %v2906_v14 }
  0x8d   : > { %s2541_s21 = scalar_lea.hbm %s3290_s23, 16 }
  0x8f   : > { %1079 = vmatpush.bf16.msrb.mxu2 %v2917_v25 }
  0xef   : > { %v875_v15 = vpop.permute.xlu0 %874 }
  0xf0   : > { %vm876_vm6 = vcmp.eq.s32.totalorder %v875_v15, 1 }
  0xf7   : > { %v2912_v19 = vpop.permute.xlu0 %880 }
  0xf9   : > { %v803_v16 = vpop.f32.mrf.mxu0 }
  0xfa   : > { %808 = vst.msk [vmem:[#allocation4] sm:$0xff] %vm807_vm5, %v803_v16  ;;  %v809_v24 = vpack.c.bf16 %v803_v16, %v803_v16 }
 0x101   : > { %v805_v18 = vpop.f32.mrf.mxu0  ;;  %v2951_v57 = vld [vmem:[#allocation4] sm:$0xff] }
 0x105   : > { %v867_v17 = vpop.f32.mrf.mxu2 }
 0x106   : > { %v877_v20 = vsel %vm876_vm6, %v867_v17, 0.0 }
 0x107   : > { %v883_v21 = vmul.f32 %v2912_v19, %v877_v20  ;;  %v2177_v35 = vclamps-f32 %v877_v20, 1e+14 }
 0x109   : > { %886 = vrot.lane.b32.xlu1 %v883_v21, %s2601_s24  ;;  %v884_v22 = vsub.f32 %v877_v20, %v883_v21 }
 0x10d   : > { %v869_v23 = vpop.f32.mrf.mxu2 }
 0x111   : > { %814 = vrot.lane.b32.xlu1 %v809_v24, %s2601_s24 }
 0x17b   : > { %v887_v26 = vpop.permute.xlu1 %886 }
 0x17c   : > { %v889_v27 = vsel %vm837_vm7, %v884_v22, %v887_v26 }
 0x17d   : > { %v890_v28 = vpack.c.bf16 %v889_v27, %v889_v27 }
 0x17f   : > { %2176 = vmatmul.msk.bf16.vlgmr.msra.gmra.mxu3 %vm839_vm0, %v890_v28 }
 0x183   : > { %v815_v29 = vpop.permute.xlu1 %814 }
 0x184   : > { %v822_v30 = vsel %vm820_vm1, %v815_v29, 0 }
 0x185   : > { %831 = vmatpush.bf16.msra.mxu1 %v822_v30 }
 0x188   : > { %2158 = vmatmul.msk.bf16.vlgmr.msra.gmra.mxu1 %vm816_vm4, %v2886_v10 }
 0x202   : > { %v927_v31 = vpop.f32.mrf.mxu3 }
 0x203   : > { %933 = vrot.lane.b32.xlu2 %v927_v31, %s2601_s24 }
 0x205   : > { %v833_v33 = vpop.f32.mrf.mxu1 }
 0x206   : > { %v834_v34 = vadd.f32 %v2324_v32, %v833_v33 }
 0x208   : > { %838 = vst.msk [vmem:[#allocation5] sm:$0xff] %vm837_vm7, %v834_v34 }
 0x20a   : > { %v929_v36 = vpop.f32.mrf.mxu3 }
 0x20b   : > { %945 = vrot.lane.b32.xlu2 %v2177_v35, %s2602_s2 }
 0x20d   : > { %v835_v37 = vpop.f32.mrf.mxu1 }
 0x20f   : > { %v2933_v38 = vld [vmem:[#allocation5] sm:$0xff] }
 0x25d   : > { %v934_v39 = vpop.permute.xlu2 %933 }
 0x25e   : > { %v936_v40 = vadd.f32 %v934_v39, %v2933_v38 }
 0x260   : > { %v937_v41 = vsub.f32 0.0, %v936_v40 }
 0x262   : > { %v938_v42 = vmul.f32 1.442695, %v937_v41 }
 0x264   : > { %2328 = vpow2.f32 %v938_v42 }
 0x265   : > { %v946_v46 = vpop.permute.xlu2 %945 }
 0x26a   : > { %v2329_v43 = vpop.eup %2328 }
 0x26b   : > { %v940_v44 = vadd.f32 1.0, %v2329_v43 }
 0x26d   : > { %2330 = vrcp.f32 %v940_v44 }
 0x273   : > { %v2331_v45 = vpop.eup %2330 }
 0x274   : > { %v948_v47 = vmul.f32 %v2331_v45, %v946_v46 }
 0x276   : > { %950 = vrot.lane.b32.xlu0 %v948_v47, %s2602_s2 }
 0x2e8   : > { %v951_v48 = vpop.permute.xlu0 %950 }
 0x2e9   : > { %v953_v49 = vsel %vm807_vm5, %v927_v31, %v951_v48 }
 0x2ea   : > { %v954_v50 = vpack.c.bf16 %v953_v49, %v953_v49 }
 0x2ec   : > { %v959_v51 = vsel %vm820_vm1, %v954_v50, 0 }
 0x2ed   : > { %968 = vmatpush.bf16.msrb.mxu0 %v959_v51 }
 0x2f0   : > { %2178 = vmatmul.msk.bf16.vlgmr.msrb.gmra.mxu0 %vm816_vm4, %v2944_v52 }
 0x36d   : > { %v970_v54 = vpop.f32.mrf.mxu0 }
 0x36e   : > { %v975_v55 = vadd.f32 %v974_v53, %v970_v54  ;;  %977 = vrot.lane.b32.xlu1 %v970_v54, %s2603_s25 }
 0x370   : > { %v982_v58 = vadd.f32 %v2951_v57, %v975_v55  ;;  %1031 = vst.msk [vmem:[#allocation3] sm:$0xff] %vm807_vm5, %v975_v55 }
 0x372   : > { %v986_v59 = vadd.f32 %v2948_v56, %v982_v58 }
 0x374   : > { %2332 = vtanh.f32 %v986_v59  ;;  %v987_v8 = vsub.f32 0.0, %v986_v59 }
 0x375   : > { %v972_v60 = vpop.f32.mrf.mxu0 }
 0x376   : > { %v988_v9 = vmul.f32 1.442695, %v987_v8 }
 0x378   : > { %2334 = vpow2.f32 %v988_v9  ;;  %v2179_v9 = vld [vmem:[%s2962_s19 + $0x8] sm:$0xff] }
 0x379   : > { %vm1151_vm12 = vcmp.gt.f32.partialorder %v2179_v9, 0.0 }
 0x37a   : > { %v2333_v61 = vpop.eup %2332 }
 0x37b   : > { %994 = vrot.lane.b32.xlu2 %v2333_v61, %s2603_s25  ;;  %v1125_v61 = vld [vmem:[#allocation3] sm:$0xff] }
 0x37e   : > { %v2335_v11 = vpop.eup %2334 }
 0x37f   : > { %v990_v15 = vadd.f32 1.0, %v2335_v11  ;;  %v3009_v11 = vsel %vm1151_vm12, 1, %v2600_v1 }
 0x381   : > { %2336 = vrcp.f32 %v990_v15 }
 0x383   : > { %1006 = vperm.xlu2 %2322, %v2966_v63  }
 0x387   : > { %v2337_v18 = vpop.eup %2336 }
 0x3d5   : > { %v995_v16 = vpop.permute.xlu2 %994 }
 0x3d6   : > { %v997_v20 = vmul.f32 %v2337_v18, %v995_v16 }
 0x3dd   : > { %v1007_v17 = vpop.permute.xlu2 %1006 }
 0x3de   : > { %vm1008_vm10 = vcmp.eq.s32.totalorder %v1007_v17, 1 }
 0x3e0   : > { %v978_v2 = vpop.permute.xlu1 %977 }
 0x3e1   : > { %v980_v4 = vadd.f32 %v978_v2, %v2876_v3 }
 0x3e3   : > { %999 = vrot.lane.b32.xlu0 %v980_v4, %s2602_s2 }
 0x3eb   : > { %1017 = vrot.lane.b32.xlu0 %v2876_v3, %s2601_s24 }
 0x3f3   : > { %1057 = vperm.xlu0 %2321, %v2975_v6  }
 0x455   : > { %v1000_v21 = vpop.permute.xlu0 %999 }
 0x456   : > { %v1002_v22 = vadd.f32 %v1000_v21, %v997_v20 }
 0x458   : > { %2338 = vtanh.f32 %v1002_v22  ;;  %v1009_v3 = vsel %vm1008_vm10, %v1002_v22, %v1000_v21 }
 0x459   : > { %1026 = vrot.lane.b32.xlu2 %v1009_v3, %s2601_s24 }
 0x45d   : > { %v1018_v27 = vpop.permute.xlu0 %1017 }
 0x45e   : > { %v2339_v23 = vpop.eup %2338 }
 0x45f   : > { %1012 = vrot.lane.b32.xlu1 %v2339_v23, %s2601_s24 }
 0x465   : > { %v1058_v35 = vpop.permute.xlu0 %1057 }
 0x466   : > { %vm1059_vm11 = vcmp.eq.s32.totalorder %v1058_v35, 1 }
 0x4b3   : > { %v1027_v29 = vpop.permute.xlu2 %1026 }
 0x4d1   : > { %v1013_v24 = vpop.permute.xlu1 %1012 }
 0x4d2   : > { %v1015_v26 = vmul.f32 %v2337_v18, %v1013_v24 }
 0x4d4   : > { %v1020_v28 = vsel %vm1008_vm10, %v1015_v26, %v1018_v27 }
 0x4d5   : > { %1022 = vrot.lane.b32.xlu1 %v1020_v28, %s2602_s2 }
 0x547   : > { %v1023_v30 = vpop.permute.xlu1 %1022 }
 0x548   : > { %v1029_v31 = vsel %vm837_vm7, %v1023_v30, %v1027_v29 }
 0x549   : > { %1030 = vst.msk [vmem:[#allocation2] sm:$0xff] %vm839_vm0, %v1029_v31 }
 0x550   : > { %v1036_v32 = vld [vmem:[#allocation2] sm:$0xff] }
 0x551   : > { %v1037_v33 = vpack.c.bf16 %v1036_v32, %v1036_v32 }
 0x553   : > { %v1039_v34 = vsel %vm820_vm1, %v1037_v33, 0 }
 0x554   : > { %1048 = vmatpush.bf16.msrb.mxu1 %v1039_v34  ;;  %v2186_v34 = vld [vmem:[%s2873_s28 + $0x10] sm:$0xff] }
 0x555   : > { %vm1202_vm14 = vcmp.gt.f32.partialorder %v2186_v34, 0.0 }
 0x556   : > { %v3019_v35 = vsel %vm1202_vm14, 1, %v2600_v1 }
 0x557   : > { %2181 = vmatmul.msk.bf16.vlgmr.msrb.gmra.mxu1 %vm816_vm4, %v2886_v10 }
 0x558   : > { %1224 = vmatpush.bf16.msra.mxu1 %v2899_v12 }
 0x55c   : > { %1225 = vmatpush.bf16.msra.mxu1 %v2902_v13 }
 0x560   : > { %1226 = vmatpush.bf16.msra.mxu1 %v2906_v14 }
 0x564   : > { %1227 = vmatpush.bf16.msra.mxu1 %v2917_v25 }
 0x5d4   : > { %v1050_v36 = vpop.f32.mrf.mxu1 }
 0x5d5   : > { %v1060_v37 = vsel %vm1059_vm11, %v1050_v36, 0.0 }
 0x5d6   : > { %v1061_v39 = vmul.f32 %v1060_v37, %v2912_v19  ;;  %v2183_v40 = vclamps-f32 %v1060_v37, 1e+14 }
 0x5d8   : > { %v1062_v41 = vsub.f32 %v1060_v37, %v1061_v39  ;;  %1099 = vrot.lane.b32.xlu0 %v2183_v40, %s2602_s2  ;;  %1064 = vrot.lane.b32.xlu1 %v1061_v39, %s2601_s24 }
 0x5dc   : > { %v1052_v12 = vpop.f32.mrf.mxu1 }
 0x64a   : > { %v1065_v42 = vpop.permute.xlu1 %1064  ;;  %v1100_v51 = vpop.permute.xlu0 %1099 }
 0x64b   : > { %v1067_v13 = vsel %vm837_vm7, %v1062_v41, %v1065_v42 }
 0x64c   : > { %v1068_v43 = vpack.c.bf16 %v1067_v13, %v1067_v13 }
 0x64e   : > { %2182 = vmatmul.msk.bf16.vlgmr.msrb.gmra.mxu2 %vm839_vm0, %v1068_v43 }
 0x6d1   : > { %v1081_v14 = vpop.f32.mrf.mxu2 }
 0x6d2   : > { %1087 = vrot.lane.b32.xlu2 %v1081_v14, %s2601_s24 }
 0x6d9   : > { %v1083_v25 = vpop.f32.mrf.mxu2 }
 0x72c   : > { %v1088_v44 = vpop.permute.xlu2 %1087 }
 0x72d   : > { %v1090_v45 = vadd.f32 %v1088_v44, %v2933_v38 }
 0x72f   : > { %v1091_v46 = vsub.f32 0.0, %v1090_v45 }
 0x731   : > { %v1092_v47 = vmul.f32 1.442695, %v1091_v46 }
 0x733   : > { %2340 = vpow2.f32 %v1092_v47 }
 0x739   : > { %v2341_v48 = vpop.eup %2340 }
 0x73a   : > { %v1094_v49 = vadd.f32 1.0, %v2341_v48 }
 0x73c   : > { %2342 = vrcp.f32 %v1094_v49 }
 0x742   : > { %v2343_v50 = vpop.eup %2342 }
 0x743   : > { %v1102_v53 = vmul.f32 %v2343_v50, %v1100_v51 }
 0x745   : > { %1104 = vrot.lane.b32.xlu1 %v1102_v53, %s2602_s2 }
 0x7b7   : > { %v1105_v54 = vpop.permute.xlu1 %1104 }
 0x7b8   : > { %v1107_v55 = vsel %vm807_vm5, %v1081_v14, %v1105_v54 }
 0x7b9   : > { %v1108_v58 = vpack.c.bf16 %v1107_v55, %v1107_v55 }
 0x7bb   : > { %v1110_v59 = vsel %vm820_vm1, %v1108_v58, 0 }
 0x7bc   : > { %1119 = vmatpush.bf16.msrb.mxu3 %v1110_v59 }
 0x7bf   : > { %2184 = vmatmul.msk.bf16.vlgmr.msrb.gmra.mxu3 %vm816_vm4, %v2944_v52 }
 0x842   : > { %v1121_v60 = vpop.f32.mrf.mxu3 }
 0x843   : > { %v1126_v62 = vadd.f32 %v1125_v61, %v1121_v60  ;;  %1128 = vrot.lane.b32.xlu2 %v1121_v60, %s2603_s25 }
 0x845   : > { %v1133_v2 = vadd.f32 %v1126_v62, %v2951_v57  ;;  %1179 = vst.msk [vmem:[#allocation3] sm:$0xff] %vm807_vm5, %v1126_v62 }
 0x847   : > { %v1134_v4 = vadd.f32 %v2948_v56, %v1133_v2 }
 0x849   : > { %2344 = vtanh.f32 %v1134_v4  ;;  %v1135_v17 = vsub.f32 0.0, %v1134_v4 }
 0x84a   : > { %v1123_v5 = vpop.f32.mrf.mxu3 }
 0x84b   : > { %v1136_v18 = vmul.f32 1.442695, %v1135_v17 }
 0x84c   : > { %v1273_v9 = vld [vmem:[#allocation3] sm:$0xff] }
 0x84d   : > { %2346 = vpow2.f32 %v1136_v18 }
 0x84f   : > { %v2345_v8 = vpop.eup %2344 }
 0x850   : > { %1142 = vrot.lane.b32.xlu0 %v2345_v8, %s2603_s25 }
 0x853   : > { %v2347_v20 = vpop.eup %2346 }
 0x854   : > { %v1138_v21 = vadd.f32 1.0, %v2347_v20 }
 0x856   : > { %2348 = vrcp.f32 %v1138_v21  ;;  %v2185_v21 = vld [vmem:[%s2962_s19 + $0x10] sm:$0xff] }
 0x857   : > { %vm1299_vm2 = vcmp.gt.f32.partialorder %v2185_v21, 0.0 }
 0x858   : > { %1154 = vperm.xlu0 %2321, %v3009_v11  }
 0x85c   : > { %v2349_v3 = vpop.eup %2348 }
 0x89d   : > { %v1129_v15 = vpop.permute.xlu2 %1128 }
 0x89e   : > { %v1131_v16 = vadd.f32 %v1129_v15, %v1036_v32 }
 0x8a0   : > { %1147 = vrot.lane.b32.xlu1 %v1131_v16, %s2602_s2 }
 0x8a8   : > { %1165 = vrot.lane.b32.xlu1 %v1036_v32, %s2601_s24 }
 0x8b0   : > { %1205 = vperm.xlu1 %2323, %v3019_v35  }
 0x8c2   : > { %v1143_v22 = vpop.permute.xlu0 %1142 }
 0x8c3   : > { %v1145_v23 = vmul.f32 %v2349_v3, %v1143_v22  ;;  %v3048_v22 = vsel %vm1299_vm2, 1, %v2600_v1 }
 0x8ca   : > { %v1155_v24 = vpop.permute.xlu0 %1154 }
 0x8cb   : > { %vm1156_vm13 = vcmp.eq.s32.totalorder %v1155_v24, 1 }
 0x912   : > { %v1148_v26 = vpop.permute.xlu1 %1147 }
 0x913   : > { %v1150_v27 = vadd.f32 %v1148_v26, %v1145_v23 }
 0x915   : > { %2350 = vtanh.f32 %v1150_v27  ;;  %v1157_v28 = vsel %vm1156_vm13, %v1150_v27, %v1148_v26 }
 0x916   : > { %1174 = vrot.lane.b32.xlu0 %v1157_v28, %s2601_s24 }
 0x91a   : > { %v1166_v32 = vpop.permute.xlu1 %1165 }
 0x91b   : > { %v2351_v29 = vpop.eup %2350 }
 0x91c   : > { %1160 = vrot.lane.b32.xlu2 %v2351_v29, %s2601_s24 }
 0x922   : > { %v1206_v42 = vpop.permute.xlu1 %1205 }
 0x923   : > { %vm1207_vm15 = vcmp.eq.s32.totalorder %v1206_v42, 1 }
 0x976   : > { %v1161_v30 = vpop.permute.xlu2 %1160 }
 0x977   : > { %v1163_v31 = vmul.f32 %v2349_v3, %v1161_v30 }
 0x979   : > { %v1168_v33 = vsel %vm1156_vm13, %v1163_v31, %v1166_v32 }
 0x97a   : > { %1170 = vrot.lane.b32.xlu2 %v1168_v33, %s2602_s2 }
 0x988   : > { %v1175_v36 = vpop.permute.xlu0 %1174 }
 0x9d4   : > { %v1171_v37 = vpop.permute.xlu2 %1170 }
 0x9d5   : > { %v1177_v39 = vsel %vm837_vm7, %v1171_v37, %v1175_v36 }
 0x9d6   : > { %1178 = vst.msk [vmem:[#allocation2] sm:$0xff] %vm839_vm0, %v1177_v39  ;;  %v2247_v39 = vld [vmem:[%s768_s27 + $0x8] sm:$0xff] }
 0x9d7   : > { %1356 = vmatpush.bf16.msra.mxu3 %v2247_v39 }
 0x9dd   : > { %v1184_v40 = vld [vmem:[#allocation2] sm:$0xff] }
 0x9de   : > { %v1185_v41 = vpack.c.bf16 %v1184_v40, %v1184_v40 }
 0x9e0   : > { %v1187_v12 = vsel %vm820_vm1, %v1185_v41, 0 }
 0x9e1   : > { %1196 = vmatpush.bf16.msra.mxu0 %v1187_v12 }
 0x9e4   : > { %2187 = vmatmul.msk.bf16.vlgmr.msra.gmra.mxu0 %vm816_vm4, %v2886_v10 }
 0xa61   : > { %v1198_v13 = vpop.f32.mrf.mxu0 }
 0xa62   : > { %v1208_v43 = vsel %vm1207_vm15, %v1198_v13, 0.0 }
 0xa63   : > { %v1209_v14 = vmul.f32 %v1208_v43, %v2912_v19  ;;  %v2189_v25 = vclamps-f32 %v1208_v43, 1e+14 }
 0xa65   : > { %v1210_v44 = vsub.f32 %v1208_v43, %v1209_v14  ;;  %1247 = vrot.lane.b32.xlu1 %v2189_v25, %s2602_s2  ;;  %1212 = vrot.lane.b32.xlu2 %v1209_v14, %s2601_s24 }
 0xa69   : > { %v1200_v45 = vpop.f32.mrf.mxu0 }
 0xa6a   : > { %v3074_v45 = vld [vmem:[%s2848_s18 + $0x18] sm:$0xff] }
 0xabf   : > { %v1213_v46 = vpop.permute.xlu2 %1212 }
 0xac0   : > { %v1215_v47 = vsel %vm837_vm7, %v1210_v44, %v1213_v46  ;;  %v3078_v46 = vld [vmem:[%s2848_s18 + $0x10] sm:$0xff] }
 0xac1   : > { %v1216_v48 = vpack.c.bf16 %v1215_v47, %v1215_v47 }
 0xac3   : > { %2188 = vmatmul.msk.bf16.vlgmr.msra.gmra.mxu1 %vm839_vm0, %v1216_v48 }
 0xad7   : > { %v1248_v61 = vpop.permute.xlu1 %1247 }
 0xb40   : > { %v1229_v49 = vpop.f32.mrf.mxu1 }
 0xb41   : > { %1235 = vrot.lane.b32.xlu0 %v1229_v49, %s2601_s24 }
 0xb48   : > { %v1231_v50 = vpop.f32.mrf.mxu1 }
 0xbb3   : > { %v1236_v51 = vpop.permute.xlu0 %1235 }
 0xbb4   : > { %v1238_v53 = vadd.f32 %v1236_v51, %v2933_v38 }
 0xbb6   : > { %v1239_v54 = vsub.f32 0.0, %v1238_v53 }
 0xbb8   : > { %v1240_v55 = vmul.f32 1.442695, %v1239_v54 }
 0xbba   : > { %2352 = vpow2.f32 %v1240_v55 }
 0xbc0   : > { %v2353_v58 = vpop.eup %2352 }
 0xbc1   : > { %v1242_v59 = vadd.f32 1.0, %v2353_v58 }
 0xbc3   : > { %2354 = vrcp.f32 %v1242_v59  ;;  %v3089_v59 = vld [vmem:[%s2848_s18 + $0x8] sm:$0xff] }
 0xbc9   : > { %v2355_v60 = vpop.eup %2354 }
 0xbca   : > { %v1250_v62 = vmul.f32 %v2355_v60, %v1248_v61  ;;  %v3094_v60 = vld [vmem:[%s2848_s18] sm:$0xff] }
 0xbcc   : > { %1252 = vrot.lane.b32.xlu2 %v1250_v62, %s2602_s2 }
 0xc26   : > { %v1253_v2 = vpop.permute.xlu2 %1252 }
 0xc27   : > { %v1255_v4 = vsel %vm807_vm5, %v1229_v49, %v1253_v2 }
 0xc28   : > { %v1256_v5 = vpack.c.bf16 %v1255_v4, %v1255_v4 }
 0xc2a   : > { %v1258_v8 = vsel %vm820_vm1, %v1256_v5, 0 }
 0xc2b   : > { %1267 = vmatpush.bf16.msra.mxu2 %v1258_v8  ;;  %v2326_v8 = vld [vmem:[%s774_s20] ss:$0 sm:$0xff] }
 0xc2e   : > { %2190 = vmatmul.msk.bf16.vlgmr.msra.gmra.mxu2 %vm816_vm4, %v2944_v52 }
 0xc2f   : > { %1465 = vmatpush.bf16.msrb.mxu2 %v3074_v45 }
 0xc33   : > { %1466 = vmatpush.bf16.msrb.mxu2 %v3078_v46 }
 0xc37   : > { %1467 = vmatpush.bf16.msrb.mxu2 %v3089_v59 }
 0xc3b   : > { %1468 = vmatpush.bf16.msrb.mxu2 %v3094_v60 }
 0xcb1   : > { %v1269_v38 = vpop.f32.mrf.mxu2 }
 0xcb2   : > { %v1274_v15 = vadd.f32 %v1273_v9, %v1269_v38  ;;  %1276 = vrot.lane.b32.xlu0 %v1269_v38, %s2603_s25 }
 0xcb4   : > { %v1281_v16 = vadd.f32 %v1274_v15, %v2951_v57  ;;  %1327 = vst.msk [vmem:[#allocation3] sm:$0xff] %vm807_vm5, %v1274_v15 }
 0xcb5   : > { %1389 = vst.msk [vmem:[#allocation3] sm:$0xff] %vm807_vm5, %v2599_v0 }
 0xcb6   : > { %v1282_v17 = vadd.f32 %v2948_v56, %v1281_v16 }
 0xcb8   : > { %2356 = vtanh.f32 %v1282_v17  ;;  %v1283_v56 = vsub.f32 0.0, %v1282_v17 }
 0xcb9   : > { %v1271_v18 = vpop.f32.mrf.mxu2 }
 0xcba   : > { %v1284_v23 = vmul.f32 1.442695, %v1283_v56 }
 0xcbc   : > { %2358 = vpow2.f32 %v1284_v23 }
 0xcbe   : > { %v2357_v20 = vpop.eup %2356 }
 0xcbf   : > { %1290 = vrot.lane.b32.xlu1 %v2357_v20, %s2603_s25 }
 0xcc2   : > { %v2359_v24 = vpop.eup %2358 }
 0xcc3   : > { %v1286_v26 = vadd.f32 1.0, %v2359_v24 }
 0xcc5   : > { %2360 = vrcp.f32 %v1286_v26 }
 0xcc7   : > { %1302 = vperm.xlu1 %2323, %v3048_v22  }
 0xccb   : > { %v2361_v28 = vpop.eup %2360 }
 0xd24   : > { %v1277_v57 = vpop.permute.xlu0 %1276 }
 0xd25   : > { %v1279_v3 = vadd.f32 %v1277_v57, %v1184_v40 }
 0xd27   : > { %1295 = vrot.lane.b32.xlu2 %v1279_v3, %s2602_s2 }
 0xd2f   : > { %1313 = vrot.lane.b32.xlu2 %v1184_v40, %s2601_s24  ;;  %v2246_v40 = vld [vmem:[%s768_s27] sm:$0xff] }
 0xd30   : > { %1357 = vmatpush.bf16.msra.mxu3 %v2246_v40 }
 0xd31   : > { %v1291_v27 = vpop.permute.xlu1 %1290 }
 0xd32   : > { %v1293_v1 = vmul.f32 %v2361_v28, %v1291_v27 }
 0xd37   : > { %1422 = vperm.xlu2 %2322, %v2881_v7  }
 0xd39   : > { %v1303_v29 = vpop.permute.xlu1 %1302 }
 0xd3a   : > { %vm1304_vm3 = vcmp.eq.s32.totalorder %v1303_v29, 1 }
 0xd81   : > { %v1296_v30 = vpop.permute.xlu2 %1295 }
 0xd82   : > { %v1298_v31 = vadd.f32 %v1296_v30, %v1293_v1 }
 0xd84   : > { %2362 = vtanh.f32 %v1298_v31  ;;  %v1305_v32 = vsel %vm1304_vm3, %v1298_v31, %v1296_v30  ;;  %v1514_v31 = vld [vmem:[#allocation3] sm:$0xff] }
 0xd85   : > { %1322 = vrot.lane.b32.xlu1 %v1305_v32, %s2601_s24 }
 0xd89   : > { %v1314_v36 = vpop.permute.xlu2 %1313 }
 0xd8a   : > { %v2363_v33 = vpop.eup %2362 }
 0xd8b   : > { %1308 = vrot.lane.b32.xlu0 %v2363_v33, %s2601_s24 }
 0xd91   : > { %v1423_v48 = vpop.permute.xlu2 %1422 }
 0xd92   : > { %vm1424_vm6 = vcmp.eq.s32.totalorder %v1423_v48, 1 }
 0xdf7   : > { %v1323_v41 = vpop.permute.xlu1 %1322 }
 0xdfd   : > { %v1309_v7 = vpop.permute.xlu0 %1308 }
 0xdfe   : > { %v1311_v34 = vmul.f32 %v2361_v28, %v1309_v7  ;;  %v3121_v7 = vld [vmem:[%s771_s15] ss:$0 sm:$0xff] }
 0xe00   : > { %v1316_v37 = vsel %vm1304_vm3, %v1311_v34, %v1314_v36 }
 0xe01   : > { %1318 = vrot.lane.b32.xlu0 %v1316_v37, %s2602_s2 }
 0xe73   : > { %v1319_v12 = vpop.permute.xlu0 %1318 }
 0xe74   : > { %v1325_v42 = vsel %vm837_vm7, %v1319_v12, %v1323_v41 }
 0xe75   : > { %1326 = vst.msk [vmem:[#allocation2] sm:$0xff] %vm839_vm0, %v1325_v42 }
 0xe7c   : > { %v1328_v13 = vld [vmem:[#allocation2] sm:$0xff] }
 0xe7d   : > { %v1334_v43 = vpack.c.bf16 %v1328_v13, %v1328_v13  ;;  %1388 = vst.msk [vmem:[#allocation2] sm:$0xff] %vm839_vm0, %v2599_v0 }
 0xe7f   : > { %2199 = vmatmul.msk.bf16.vlgmr.msra.gmra.mxu3 %vm837_vm7, %v1334_v43 }
 0xe84   : > { %v3066_v14 = vld [vmem:[#allocation2] sm:$0xff] }
 0xe85   : > { %v1402_v25 = vpack.c.bf16 %v3066_v14, %v3066_v14 }
 0xe87   : > { %v1404_v44 = vsel %vm820_vm1, %v1402_v25, 0 }
 0xe88   : > { %1413 = vmatpush.bf16.msrb.mxu1 %v1404_v44 }
 0xe8b   : > { %2201 = vmatmul.msk.bf16.vlgmr.msrb.gmra.mxu1 %vm816_vm4, %v2886_v10 }
 0xe8c   : > { %1614 = vmatpush.bf16.msra.mxu1 %v3074_v45 }
 0xe90   : > { %1615 = vmatpush.bf16.msra.mxu1 %v3078_v46 }
 0xe94   : > { %1616 = vmatpush.bf16.msra.mxu1 %v3089_v59 }
 0xe98   : > { %1617 = vmatpush.bf16.msra.mxu1 %v3094_v60 }
 0xf02   : > { %v1359_v0 = vpop.f32.mrf.mxu3 }
 0xf03   : > { %1363 = vst.msk [vmem:[#allocation4] sm:$0xff] %vm807_vm5, %v1359_v0  ;;  %v1364_v47 = vpack.c.bf16 %v1359_v0, %v1359_v0 }
 0xf05   : > { %1369 = vrot.lane.b32.xlu1 %v1364_v47, %s2601_s24 }
 0xf08   : > { %v1415_v49 = vpop.f32.mrf.mxu1 }
 0xf09   : > { %v1425_v50 = vsel %vm1424_vm6, %v1415_v49, 0.0 }
 0xf0a   : > { %v1426_v51 = vmul.f32 %v1425_v50, %v2912_v19  ;;  %v1361_v53 = vpop.f32.mrf.mxu3  ;;  %v2219_v58 = vclamps-f32 %v1425_v50, 1e+14  ;;  %v3124_v34 = vld [vmem:[#allocation4] sm:$0xff] }
 0xf0c   : > { %v1427_v54 = vsub.f32 %v1425_v50, %v1426_v51  ;;  %1429 = vrot.lane.b32.xlu0 %v1426_v51, %s2601_s24 }
 0xf10   : > { %v1417_v55 = vpop.f32.mrf.mxu1 }
 0xf14   : > { %1488 = vrot.lane.b32.xlu0 %v2219_v58, %s2602_s2 }
 0xf77   : > { %v1370_v61 = vpop.permute.xlu1 %1369 }
 0xf78   : > { %v1372_v62 = vsel %vm820_vm1, %v1370_v61, 0 }
 0xf79   : > { %1381 = vmatpush.bf16.msrb.mxu0 %v1372_v62 }
 0xf7c   : > { %2200 = vmatmul.msk.bf16.vlgmr.msrb.gmra.mxu0 %vm816_vm4, %v2886_v10 }
 0xf7e   : > { %v1430_v2 = vpop.permute.xlu0 %1429 }
 0xf7f   : > { %v1432_v4 = vsel %vm837_vm7, %v1427_v54, %v1430_v2 }
 0xf80   : > { %v1433_v5 = vpack.c.bf16 %v1432_v4, %v1432_v4 }
 0xf82   : > { %2218 = vmatmul.msk.bf16.vlgmr.msrb.gmra.mxu2 %vm839_vm0, %v1433_v5 }
 0xf86   : > { %v1489_v26 = vpop.permute.xlu0 %1488 }
 0xff9   : > { %v1383_v38 = vpop.f32.mrf.mxu0 }
 0xffa   : > { %v1384_v9 = vadd.f32 %v2326_v8, %v1383_v38 }
 0xffc   : > { %1387 = vst.msk [vmem:[#allocation5] sm:$0xff] %vm837_vm7, %v1384_v9 }
0x1001   : > { %v1385_v15 = vpop.f32.mrf.mxu0 }
0x1003   : > { %v3109_v18 = vld [vmem:[#allocation5] sm:$0xff] }
0x1005   : > { %v1470_v16 = vpop.f32.mrf.mxu2 }
0x1006   : > { %1476 = vrot.lane.b32.xlu2 %v1470_v16, %s2601_s24 }
0x100d   : > { %v1472_v17 = vpop.f32.mrf.mxu2 }
0x1060   : > { %v1477_v20 = vpop.permute.xlu2 %1476 }
0x1061   : > { %v1479_v21 = vadd.f32 %v1477_v20, %v3109_v18 }
0x1063   : > { %v1480_v57 = vsub.f32 0.0, %v1479_v21 }
0x1065   : > { %v1481_v3 = vmul.f32 1.442695, %v1480_v57 }
0x1067   : > { %2364 = vpow2.f32 %v1481_v3 }
0x106d   : > { %v2365_v56 = vpop.eup %2364 }
0x106e   : > { %v1483_v23 = vadd.f32 1.0, %v2365_v56 }
0x1070   : > { %2366 = vrcp.f32 %v1483_v23 }
0x1076   : > { %v2367_v24 = vpop.eup %2366 }
0x1077   : > { %v1491_v27 = vmul.f32 %v2367_v24, %v1489_v26 }
0x1079   : > { %1493 = vrot.lane.b32.xlu1 %v1491_v27, %s2602_s2 }
0x10eb   : > { %v1494_v28 = vpop.permute.xlu1 %1493 }
0x10ec   : > { %v1496_v1 = vsel %vm807_vm5, %v1470_v16, %v1494_v28 }
0x10ed   : > { %v1497_v29 = vpack.c.bf16 %v1496_v1, %v1496_v1 }
0x10ef   : > { %v1499_v30 = vsel %vm820_vm1, %v1497_v29, 0 }
0x10f0   : > { %1508 = vmatpush.bf16.msrb.mxu3 %v1499_v30 }
0x10f3   : > { %2220 = vmatmul.msk.bf16.vlgmr.msrb.gmra.mxu3 %vm816_vm4, %v2944_v52 }
0x1176   : > { %v1510_v32 = vpop.f32.mrf.mxu3 }
0x1177   : > { %v1515_v33 = vadd.f32 %v1514_v31, %v1510_v32  ;;  %1517 = vrot.lane.b32.xlu2 %v1510_v32, %s2603_s25 }
0x1179   : > { %v1522_v36 = vadd.f32 %v3124_v34, %v1515_v33  ;;  %1571 = vst.msk [vmem:[#allocation3] sm:$0xff] %vm807_vm5, %v1515_v33 }
0x117b   : > { %v1526_v37 = vadd.f32 %v3121_v7, %v1522_v36 }
0x117d   : > { %2368 = vtanh.f32 %v1526_v37  ;;  %v1527_v42 = vsub.f32 0.0, %v1526_v37 }
0x117e   : > { %v1512_v39 = vpop.f32.mrf.mxu3 }
0x117f   : > { %v1528_v13 = vmul.f32 1.442695, %v1527_v42 }
0x1180   : > { %v1663_v32 = vld [vmem:[#allocation3] sm:$0xff] }
0x1181   : > { %2370 = vpow2.f32 %v1528_v13 }
0x1183   : > { %v2369_v40 = vpop.eup %2368 }
0x1184   : > { %1534 = vrot.lane.b32.xlu0 %v2369_v40, %s2603_s25 }
0x1187   : > { %v2371_v43 = vpop.eup %2370 }
0x1188   : > { %v1530_v25 = vadd.f32 1.0, %v2371_v43 }
0x118a   : > { %2372 = vrcp.f32 %v1530_v25 }
0x118c   : > { %1546 = vperm.xlu0 %2321, %v2966_v63  }
0x1190   : > { %v2373_v0 = vpop.eup %2372 }
0x11d1   : > { %v1518_v41 = vpop.permute.xlu2 %1517 }
0x11d2   : > { %v1520_v12 = vadd.f32 %v1518_v41, %v3066_v14 }
0x11d4   : > { %1539 = vrot.lane.b32.xlu1 %v1520_v12, %s2602_s2 }
0x11dc   : > { %1557 = vrot.lane.b32.xlu1 %v3066_v14, %s2601_s24 }
0x11e4   : > { %1595 = vperm.xlu1 %2323, %v2975_v6  }
0x11f6   : > { %v1535_v44 = vpop.permute.xlu0 %1534 }
0x11f7   : > { %v1537_v47 = vmul.f32 %v2373_v0, %v1535_v44 }
0x11fe   : > { %v1547_v63 = vpop.permute.xlu0 %1546 }
0x11ff   : > { %vm1548_vm8 = vcmp.eq.s32.totalorder %v1547_v63, 1 }
0x1246   : > { %v1540_v48 = vpop.permute.xlu1 %1539 }
0x1247   : > { %v1542_v49 = vadd.f32 %v1540_v48, %v1537_v47 }
0x1249   : > { %2374 = vtanh.f32 %v1542_v49  ;;  %v1549_v50 = vsel %vm1548_vm8, %v1542_v49, %v1540_v48 }
0x124a   : > { %1566 = vrot.lane.b32.xlu0 %v1549_v50, %s2601_s24 }
0x124e   : > { %v1558_v53 = vpop.permute.xlu1 %1557 }
0x124f   : > { %v2375_v14 = vpop.eup %2374 }
0x1250   : > { %1552 = vrot.lane.b32.xlu2 %v2375_v14, %s2601_s24 }
0x1256   : > { %v1596_v5 = vpop.permute.xlu1 %1595 }
0x1257   : > { %vm1597_vm9 = vcmp.eq.s32.totalorder %v1596_v5, 1 }
0x12aa   : > { %v1553_v6 = vpop.permute.xlu2 %1552 }
0x12ab   : > { %v1555_v51 = vmul.f32 %v2373_v0, %v1553_v6 }
0x12ad   : > { %v1560_v54 = vsel %vm1548_vm8, %v1555_v51, %v1558_v53 }
0x12ae   : > { %1562 = vrot.lane.b32.xlu2 %v1560_v54, %s2602_s2 }
0x12bc   : > { %v1567_v55 = vpop.permute.xlu0 %1566 }
0x1308   : > { %v1563_v58 = vpop.permute.xlu2 %1562 }
0x1309   : > { %v1569_v61 = vsel %vm837_vm7, %v1563_v58, %v1567_v55 }
0x130a   : > { %1570 = vst.msk [vmem:[#allocation2] sm:$0xff] %vm839_vm0, %v1569_v61 }
0x1311   : > { %v1574_v62 = vld [vmem:[#allocation2] sm:$0xff] }
0x1312   : > { %v1575_v2 = vpack.c.bf16 %v1574_v62, %v1574_v62 }
0x1314   : > { %v1577_v4 = vsel %vm820_vm1, %v1575_v2, 0  ;;  %v2400_v2 = vld [vmem:[%s2830_s29] sm:$0xf]  ;;  %s2234_s29 = sshll.u32 %s2700_s17, 3  ;;  %s1867_s17 = scalar_lea.sflag [#allocation8], %s2826_s26 }
0x1315   : > { %1586 = vmatpush.bf16.msra.mxu0 %v1577_v4  ;;  %s1877_s28 = scalar_lea.hbm %s3290_s23, %s2234_s29 }
0x1316   : > { %s1881_s14 = sshll.u32 %s1877_s28, 4  ;;  %s1882_s14 = int_to_ptr.hbm [resolvable:$true] %s1881_s14 }
0x1318   : > { %2223 = vmatmul.msk.bf16.vlgmr.msra.gmra.mxu0 %vm816_vm4, %v2886_v10 }
0x1319   : > { %1760 = vmatpush.bf16.msrb.mxu0 %v3074_v45 }
0x131d   : > { %1761 = vmatpush.bf16.msrb.mxu0 %v3078_v46 }
0x1321   : > { %1762 = vmatpush.bf16.msrb.mxu0 %v3089_v59 }
0x1325   : > { %1763 = vmatpush.bf16.msrb.mxu0 %v3094_v60 }
0x1395   : > { %v1588_v8 = vpop.f32.mrf.mxu0 }
0x1396   : > { %v1598_v38 = vsel %vm1597_vm9, %v1588_v8, 0.0 }
0x1397   : > { %v1599_v9 = vmul.f32 %v1598_v38, %v2912_v19  ;;  %v2225_v15 = vclamps-f32 %v1598_v38, 1e+14 }
0x1399   : > { %v1600_v16 = vsub.f32 %v1598_v38, %v1599_v9  ;;  %1637 = vrot.lane.b32.xlu1 %v2225_v15, %s2602_s2  ;;  %1602 = vrot.lane.b32.xlu2 %v1599_v9, %s2601_s24 }
0x139d   : > { %v1590_v45 = vpop.f32.mrf.mxu0 }
0x13f3   : > { %v1603_v10 = vpop.permute.xlu2 %1602 }
0x13f4   : > { %v1605_v46 = vsel %vm837_vm7, %v1600_v16, %v1603_v10 }
0x13f5   : > { %v1606_v17 = vpack.c.bf16 %v1605_v46, %v1605_v46 }
0x13f7   : > { %2224 = vmatmul.msk.bf16.vlgmr.msra.gmra.mxu1 %vm839_vm0, %v1606_v17 }
0x140b   : > { %v1638_v26 = vpop.permute.xlu1 %1637 }
0x1474   : > { %v1619_v59 = vpop.f32.mrf.mxu1 }
0x1475   : > { %1625 = vrot.lane.b32.xlu0 %v1619_v59, %s2601_s24 }
0x147c   : > { %v1621_v60 = vpop.f32.mrf.mxu1 }
0x14e7   : > { %v1626_v20 = vpop.permute.xlu0 %1625 }
0x14e8   : > { %v1628_v21 = vadd.f32 %v1626_v20, %v3109_v18 }
0x14ea   : > { %v1629_v57 = vsub.f32 0.0, %v1628_v21 }
0x14ec   : > { %v1630_v3 = vmul.f32 1.442695, %v1629_v57 }
0x14ee   : > { %2376 = vpow2.f32 %v1630_v3 }
0x14f4   : > { %v2377_v56 = vpop.eup %2376 }
0x14f5   : > { %v1632_v23 = vadd.f32 1.0, %v2377_v56 }
0x14f7   : > { %2378 = vrcp.f32 %v1632_v23 }
0x14fd   : > { %v2379_v24 = vpop.eup %2378 }
0x14fe   : > { %v1640_v27 = vmul.f32 %v2379_v24, %v1638_v26 }
0x1500   : > { %1642 = vrot.lane.b32.xlu2 %v1640_v27, %s2602_s2 }
0x155a   : > { %v1643_v28 = vpop.permute.xlu2 %1642 }
0x155b   : > { %v1645_v1 = vsel %vm807_vm5, %v1619_v59, %v1643_v28 }
0x155c   : > { %v1646_v29 = vpack.c.bf16 %v1645_v1, %v1645_v1 }
0x155e   : > { %v1648_v30 = vsel %vm820_vm1, %v1646_v29, 0 }
0x155f   : > { %1657 = vmatpush.bf16.msra.mxu2 %v1648_v30 }
0x1562   : > { %2226 = vmatmul.msk.bf16.vlgmr.msra.gmra.mxu2 %vm816_vm4, %v2944_v52 }
0x15e5   : > { %v1659_v31 = vpop.f32.mrf.mxu2 }
0x15e6   : > { %v1664_v33 = vadd.f32 %v1663_v32, %v1659_v31  ;;  %1666 = vrot.lane.b32.xlu0 %v1659_v31, %s2603_s25 }
0x15e8   : > { %v1671_v36 = vadd.f32 %v1664_v33, %v3124_v34  ;;  %1717 = vst.msk [vmem:[#allocation3] sm:$0xff] %vm807_vm5, %v1664_v33 }
0x15ea   : > { %v1672_v37 = vadd.f32 %v3121_v7, %v1671_v36 }
0x15ec   : > { %2380 = vtanh.f32 %v1672_v37  ;;  %v1673_v42 = vsub.f32 0.0, %v1672_v37 }
0x15ed   : > { %v1661_v39 = vpop.f32.mrf.mxu2 }
0x15ee   : > { %v1674_v13 = vmul.f32 1.442695, %v1673_v42 }
0x15ef   : > { %v1809_v29 = vld [vmem:[#allocation3] sm:$0xff] }
0x15f0   : > { %2382 = vpow2.f32 %v1674_v13 }
0x15f2   : > { %v2381_v40 = vpop.eup %2380 }
0x15f3   : > { %1680 = vrot.lane.b32.xlu1 %v2381_v40, %s2603_s25 }
0x15f6   : > { %v2383_v43 = vpop.eup %2382 }
0x15f7   : > { %v1676_v25 = vadd.f32 1.0, %v2383_v43 }
0x15f9   : > { %2384 = vrcp.f32 %v1676_v25 }
0x15fb   : > { %1692 = vperm.xlu1 %2323, %v3009_v11  }
0x15ff   : > { %v2385_v0 = vpop.eup %2384 }
0x1658   : > { %v1667_v41 = vpop.permute.xlu0 %1666 }
0x1659   : > { %v1669_v12 = vadd.f32 %v1667_v41, %v1574_v62 }
0x165b   : > { %1685 = vrot.lane.b32.xlu2 %v1669_v12, %s2602_s2 }
0x1663   : > { %1703 = vrot.lane.b32.xlu2 %v1574_v62, %s2601_s24 }
0x1665   : > { %v1681_v44 = vpop.permute.xlu1 %1680 }
0x1666   : > { %v1683_v47 = vmul.f32 %v2385_v0, %v1681_v44 }
0x166b   : > { %1741 = vperm.xlu2 %2322, %v3019_v35  }
0x166d   : > { %v1693_v63 = vpop.permute.xlu1 %1692 }
0x166e   : > { %vm1694_vm10 = vcmp.eq.s32.totalorder %v1693_v63, 1 }
0x16b5   : > { %v1686_v48 = vpop.permute.xlu2 %1685 }
0x16b6   : > { %v1688_v11 = vadd.f32 %v1686_v48, %v1683_v47 }
0x16b8   : > { %2386 = vtanh.f32 %v1688_v11  ;;  %v1695_v49 = vsel %vm1694_vm10, %v1688_v11, %v1686_v48 }
0x16b9   : > { %1712 = vrot.lane.b32.xlu1 %v1695_v49, %s2601_s24 }
0x16bd   : > { %v1704_v6 = vpop.permute.xlu2 %1703 }
0x16be   : > { %v2387_v50 = vpop.eup %2386 }
0x16bf   : > { %1698 = vrot.lane.b32.xlu0 %v2387_v50, %s2601_s24 }
0x16c5   : > { %v1742_v4 = vpop.permute.xlu2 %1741 }
0x16c6   : > { %vm1743_vm11 = vcmp.eq.s32.totalorder %v1742_v4, 1 }
0x172b   : > { %v1713_v53 = vpop.permute.xlu1 %1712 }
0x1731   : > { %v1699_v35 = vpop.permute.xlu0 %1698 }
0x1732   : > { %v1701_v14 = vmul.f32 %v2385_v0, %v1699_v35 }
0x1734   : > { %v1706_v51 = vsel %vm1694_vm10, %v1701_v14, %v1704_v6 }
0x1735   : > { %1708 = vrot.lane.b32.xlu0 %v1706_v51, %s2602_s2 }
0x17a7   : > { %v1709_v54 = vpop.permute.xlu0 %1708 }
0x17a8   : > { %v1715_v55 = vsel %vm837_vm7, %v1709_v54, %v1713_v53 }
0x17a9   : > { %1716 = vst.msk [vmem:[#allocation2] sm:$0xff] %vm839_vm0, %v1715_v55 }
0x17b0   : > { %v1720_v58 = vld [vmem:[#allocation2] sm:$0xff] }
0x17b1   : > { %v1721_v61 = vpack.c.bf16 %v1720_v58, %v1720_v58 }
0x17b3   : > { %v1723_v62 = vsel %vm820_vm1, %v1721_v61, 0 }
0x17b4   : > { %1732 = vmatpush.bf16.msra.mxu3 %v1723_v62 }
0x17b7   : > { %2229 = vmatmul.msk.bf16.vlgmr.msra.gmra.mxu3 %vm816_vm4, %v2400_v2 }
0x183a   : > { %v1734_v5 = vpop.f32.mrf.mxu3 }
0x183b   : > { %v1744_v8 = vsel %vm1743_vm11, %v1734_v5, 0.0 }
0x183c   : > { %v1745_v38 = vmul.f32 %v1744_v8, %v2912_v19  ;;  %v2231_v9 = vclamps-f32 %v1744_v8, 1e+14 }
0x183e   : > { %v1746_v15 = vsub.f32 %v1744_v8, %v1745_v38  ;;  %1783 = vrot.lane.b32.xlu2 %v2231_v9, %s2602_s2  ;;  %1748 = vrot.lane.b32.xlu0 %v1745_v38, %s2601_s24 }
0x1842   : > { %v1736_v16 = vpop.f32.mrf.mxu3 }
0x1898   : > { %v1784_v23 = vpop.permute.xlu2 %1783 }
0x18b0   : > { %v1749_v45 = vpop.permute.xlu0 %1748 }
0x18b1   : > { %v1751_v10 = vsel %vm837_vm7, %v1746_v15, %v1749_v45 }
0x18b2   : > { %v1752_v46 = vpack.c.bf16 %v1751_v10, %v1751_v10 }
0x18b4   : > { %2230 = vmatmul.msk.bf16.vlgmr.msrb.gmra.mxu0 %vm839_vm0, %v1752_v46 }
0x1931   : > { %v1765_v17 = vpop.f32.mrf.mxu0 }
0x1932   : > { %1771 = vrot.lane.b32.xlu1 %v1765_v17, %s2601_s24 }
0x1939   : > { %v1767_v59 = vpop.f32.mrf.mxu0 }
0x19a4   : > { %v1772_v60 = vpop.permute.xlu1 %1771 }
0x19a5   : > { %v1774_v19 = vadd.f32 %v1772_v60, %v3109_v18 }
0x19a7   : > { %v1775_v20 = vsub.f32 0.0, %v1774_v19 }
0x19a9   : > { %v1776_v21 = vmul.f32 1.442695, %v1775_v20 }
0x19ab   : > { %2388 = vpow2.f32 %v1776_v21 }
0x19b1   : > { %v2389_v57 = vpop.eup %2388 }
0x19b2   : > { %v1778_v3 = vadd.f32 1.0, %v2389_v57 }
0x19b4   : > { %2390 = vrcp.f32 %v1778_v3 }
0x19ba   : > { %v2391_v56 = vpop.eup %2390 }
0x19bb   : > { %v1786_v24 = vmul.f32 %v2391_v56, %v1784_v23 }
0x19bd   : > { %1788 = vrot.lane.b32.xlu0 %v1786_v24, %s2602_s2 }
0x1a2f   : > { %v1789_v26 = vpop.permute.xlu0 %1788 }
0x1a30   : > { %v1791_v27 = vsel %vm807_vm5, %v1765_v17, %v1789_v26 }
0x1a31   : > { %v1792_v28 = vpack.c.bf16 %v1791_v27, %v1791_v27 }
0x1a33   : > { %v1794_v1 = vsel %vm820_vm1, %v1792_v28, 0 }
0x1a34   : > { %1803 = vmatpush.bf16.msrb.mxu1 %v1794_v1 }
0x1a37   : > { %2232 = vmatmul.msk.bf16.vlgmr.msrb.gmra.mxu1 %vm816_vm4, %v2944_v52 }
0x1ab4   : > { %v1805_v18 = vpop.f32.mrf.mxu1 }
0x1ab5   : > { %v1810_v30 = vadd.f32 %v1809_v29, %v1805_v18  ;;  %1812 = vrot.lane.b32.xlu1 %v1805_v18, %s2603_s25 }
0x1ab7   : > { %v1817_v31 = vadd.f32 %v1810_v30, %v3124_v34  ;;  %1863 = vst.msk [vmem:[#allocation3] sm:$0xff] %vm807_vm5, %v1810_v30 }
0x1ab9   : > { %v1818_v32 = vadd.f32 %v3121_v7, %v1817_v31 }
0x1abb   : > { %2392 = vtanh.f32 %v1818_v32  ;;  %v1819_v39 = vsub.f32 0.0, %v1818_v32 }
0x1abc   : > { %v1807_v33 = vpop.f32.mrf.mxu1 }
0x1abd   : > { %v1820_v40 = vmul.f32 1.442695, %v1819_v39 }
0x1abf   : > { %2394 = vpow2.f32 %v1820_v40 }
0x1ac1   : > { %v2393_v36 = vpop.eup %2392 }
0x1ac2   : > { %1826 = vrot.lane.b32.xlu2 %v2393_v36, %s2603_s25 }
0x1ac5   : > { %v2395_v34 = vpop.eup %2394 }
0x1ac6   : > { %v1822_v41 = vadd.f32 1.0, %v2395_v34 }
0x1ac8   : > { %2396 = vrcp.f32 %v1822_v41 }
0x1aca   : > { %1838 = vperm.xlu2 %2322, %v3048_v22  }
0x1ace   : > { %v2397_v7 = vpop.eup %2396 }
0x1b1c   : > { %v1827_v12 = vpop.permute.xlu2 %1826 }
0x1b1d   : > { %v1829_v42 = vmul.f32 %v2397_v7, %v1827_v12 }
0x1b24   : > { %v1839_v13 = vpop.permute.xlu2 %1838 }
0x1b25   : > { %vm1840_vm1 = vcmp.eq.s32.totalorder %v1839_v13, 1 }
0x1b27   : > { %v1813_v37 = vpop.permute.xlu1 %1812 }
0x1b28   : > { %v1815_v52 = vadd.f32 %v1813_v37, %v1720_v58 }
0x1b2a   : > { %1831 = vrot.lane.b32.xlu0 %v1815_v52, %s2602_s2 }
0x1b32   : > { %1849 = vrot.lane.b32.xlu0 %v1720_v58, %s2601_s24 }
0x1b9c   : > { %v1832_v43 = vpop.permute.xlu0 %1831 }
0x1b9d   : > { %v1834_v25 = vadd.f32 %v1832_v43, %v1829_v42 }
0x1b9f   : > { %2398 = vtanh.f32 %v1834_v25  ;;  %v1841_v22 = vsel %vm1840_vm1, %v1834_v25, %v1832_v43 }
0x1ba0   : > { %1858 = vrot.lane.b32.xlu2 %v1841_v22, %s2601_s24 }
0x1ba4   : > { %v1850_v63 = vpop.permute.xlu0 %1849 }
0x1ba5   : > { %v2399_v44 = vpop.eup %2398 }
0x1ba6   : > { %1844 = vrot.lane.b32.xlu1 %v2399_v44, %s2601_s24  ;;  %s734_s24 = scalar_lea.vmem [#allocation14], %s2142_s8 }
0x1ba7   : > { %s1879_s9 = sshll.u32 %s734_s24, 4  ;;  %s1880_s9 = int_to_ptr.vmem [resolvable:$true] %s1879_s9 }
0x1bfa   : > { %v1859_v11 = vpop.permute.xlu2 %1858 }
0x1c18   : > { %v1845_v0 = vpop.permute.xlu1 %1844 }
0x1c19   : > { %v1847_v47 = vmul.f32 %v2397_v7, %v1845_v0 }
0x1c1b   : > { %v1852_v48 = vsel %vm1840_vm1, %v1847_v47, %v1850_v63 }
0x1c1c   : > { %1854 = vrot.lane.b32.xlu1 %v1852_v48, %s2602_s2  ;;  %s2535_s2 = sshra.s32 %s1882_s14, 4  ;;  %s2536_s2 = int_to_ptr.hbm [resolvable:$true] %s2535_s2 }
0x1c1d   : > { %s2537_s27 = scalar_lea.hbm %s2536_s2, 8  ;;  %p2542_p4 = scmp.lt.s32.totalorder %s2536_s2, %s3290_s23 }
0x1c1e   : > { %p2538_p6 = scmp.ne.s32.totalorder %s2536_s2, %s2537_s27  ;;  %p2543_p5 = scmp.lt.s32.totalorder %s2541_s21, %s2537_s27 }
0x1c20   : > { %p2539_p2 = pnand %p2538_p6, %p2725_p11  ;;  %p2544_p7 = por %p2543_p5, %p2542_p4 }
0x1c22   : > { %p2540_p3 = pneg %p2539_p2 }
0x1c24   : > { %p2545_p0 = pnand %p2544_p7, %p2540_p3 }
0x1c8e   : > { %v1855_v49 = vpop.permute.xlu1 %1854 }
0x1c8f   : > { %v1861_v50 = vsel %vm837_vm7, %v1855_v49, %v1859_v11 }
0x1c90   : > { %1862 = vst.msk [vmem:[#allocation2] sm:$0xff] %vm839_vm0, %v1861_v50 }
0x1c97   : > { %v1864_v35 = vld [vmem:[#allocation2] sm:$0xff] }
0x1c98   : > { %1865 = vst.msk [vmem:[%s734_s24] sm:$0xff] %vm837_vm7, %v1864_v35 }
0x1c99   : > { %2548 = shalt.err (!%p2545_p0)
}
0x1c9a   : > { %2261 = dma.vmem_to_hbm [thread:$0]  (%p2725_p11), %s1880_s9, 128, %s1882_s14, %s1867_s17  }
0x1c9b PF: > { %s3291_s26 = sld [smem:[#allocation19_spill]]  ;;  %p2277_p8 = pnand %p2128_p9, %p2729_p12 }
0x1c9d   : > { %p2278_p10 = pneg %p2277_p8 }
0x1ca1   : > { %s1893_s5 = sand.u32 1, %s3291_s26  }
0x1ca2   : > { %s1894_s10 = scalar_lea.sflag [#allocation8], %s1893_s5 }
0x1ca3   : > { %2578 = dma.done.wait (%p2278_p10), %s1894_s10, 128  }
0x1ca4   : > { %2580 = vsyncadd (%p2278_p10), %s1894_s10, 4294967168  ;;  %s3293_s16 = sld [smem:[#allocation21_spill]]  ;;  %s3296_s29 = smov %s2587_s30 }
0x1ca5   : > { %s3294_s15 = sld [smem:[#allocation20_spill]] }
0x1ca6   : > { %s3295_s25 = sld [smem:[#allocation22_spill]] }
0x1caa   : > { %p33_p1 = scmp.ge.s32.totalorder %s3293_s16, 4  }
0x1cab   : > { %s3297_s30 = smov %s3294_s15 }
0x1cac   : > { %s3298_s15 = smov %s3295_s25  ;;  %35 = sbr.rel (!%p33_p1) target bundleno = 18 (0x12), region = 192 }
0x1cb1   :  { %1900 = vsyncpa [#allocation7], 1 }
0x1cb2   :  { %1902 = vsyncpa [#allocation7 + $0x1], 1 }
0x1cb3   :  { %1903 = vsyncpa [#allocation10], 1 }
0x1cb4   :  { %1905 = vsyncpa [#allocation10 + $0x1], 1 }
0x1cb5   :  { %1906 = vsyncpa [#allocation13], 1 }
0x1cb6   :  { %1908 = vsyncpa [#allocation13 + $0x1], 1 }
0x1cb7   :  { %1909 = vsyncpa [#allocation8], 1 }
0x1cb8   :  { %1911 = vsyncpa [#allocation8 + $0x1], 1 }

</bundles_post_ra>
